<compile_context>
chip_gen: v7x
topology: tpu7x:2x2x1
jax: 0.10.0
libtpu: 0.0.40
codegen_flags: <defaults>
</compile_context>

<pallas_src>
import jax
import jax.numpy as jnp
from jax import lax
from jax.experimental import pallas as pl
from jax.experimental.pallas import tpu as pltpu


# ----------------------------------------------------------------------------
# Fused Pallas kernel (one batch-chunk per grid step; batch on the lane axis)
# ----------------------------------------------------------------------------
def _make_tcn_kernel(block_meta, k, Lseq, pad_max, seg, Nc, C_max):
    """block_meta: tuple of dicts of static ints: c_in, c_out, dilation, has_down.

    Layout: channels on sublanes; the lane axis holds Nc samples, each a
    segment of `seg = pad_max + Lseq` columns whose first pad_max columns are
    zero (causal left pad).  The "output frame" is the lane range
    [pad_max, Nc*seg) of the scratch, width Wout = Nc*seg - pad_max.
    """
    Wtot = Nc * seg
    Wout = Wtot - pad_max

    def kernel(*refs):
        it = iter(refs)
        x_ref = next(it)                    # (C_in0, Wtot)  pre-padded input chunk
        mask_ref = next(it)                 # (1, Wout)      1.0 at activation cols
        blk_refs = []
        for meta in block_meta:
            w1 = next(it); b1 = next(it)    # (k, C_out, C_in), (C_out, 1)
            w2 = next(it); b2 = next(it)    # (k, C_out, C_out), (C_out, 1)
            if meta["has_down"]:
                wd = next(it); bd = next(it)  # (C_out, C_in), (C_out, 1)
            else:
                wd = bd = None
            blk_refs.append((w1, b1, w2, b2, wd, bd))
        lin_w = next(it)                    # (O, C_last)
        lin_b = next(it)                    # (O, 1)
        o_ref = next(it)                    # (O, Nc)
        A = next(it)                        # VMEM (C_max, Wtot)  block in/out ping
        B = next(it)                        # VMEM (C_max, Wtot)  conv1 intermediate

        # Invariant: every "pad" column of a scratch that a conv reads is zero.
        #  * leading strip [0, pad_max): zeroed here (tiny: C_max x pad_max),
        #  * interior per-sample strips: kept zero by the `* mask` on writes.
        if pad_max > 0:
            zstrip = jnp.zeros((C_max, pad_max), jnp.float32)
            A[:, 0:pad_max] = zstrip
            B[:, 0:pad_max] = zstrip

        mask = mask_ref[...]                # (1, Wout)

        def causal_conv(src, c_in, c_out, w_ref, b_ref, dilation):
            # Output frame column m <- sum_j w[j] @ src[:, m + pad_max - shift_j].
            acc = jnp.zeros((c_out, Wout), jnp.float32)
            for j in range(k):                         # static: k == kernel_size
                shift = (k - 1 - j) * dilation         # causal shift of tap j
                start = pad_max - shift                # >= 0 because shift <= pad_max
                xj = src[0:c_in, start:start + Wout]   # (c_in, Wout)
                acc = acc + jnp.dot(w_ref[j], xj,
                                    preferred_element_type=jnp.float32)
            return jnp.maximum(acc + b_ref[...], 0.0)  # bias + ReLU

        src = x_ref                                    # block 0 reads the input directly
        n_blocks = len(block_meta)
        for bi, (meta, (w1, b1, w2, b2, wd, bd)) in enumerate(zip(block_meta, blk_refs)):
            c_in, c_out, d = meta["c_in"], meta["c_out"], meta["dilation"]

            # conv1 + ReLU  (dropout1 == identity at inference)
            h1 = causal_conv(src, c_in, c_out, w1, b1, d)
            B[0:c_out, pad_max:Wtot] = h1 * mask       # masked write keeps pad cols zero

            # conv2 + ReLU  (dropout2 == identity at inference)
            h2 = causal_conv(B, c_out, c_out, w2, b2, d)

            # residual (1x1 conv if channel counts differ, else identity)
            if meta["has_down"]:
                res = jnp.dot(wd[...], src[0:c_in, pad_max:Wtot],
                              preferred_element_type=jnp.float32) + bd[...]
            else:
                res = src[0:c_in, pad_max:Wtot]

            out = jnp.maximum(h2 + res, 0.0)           # (c_out, Wout)

            if bi + 1 < n_blocks:
                A[0:c_out, pad_max:Wtot] = out * mask  # becomes next block's input
                src = A
            else:
                # Final Linear on the LAST sequence position of every sample,
                # sliced before the matmul (no work on discarded positions).
                cols = [out[:, n * seg + Lseq - 1: n * seg + Lseq]
                        for n in range(Nc)]            # each (c_last, 1)
                ylast = cols[0] if Nc == 1 else jnp.concatenate(cols, axis=1)
                o = jnp.dot(lin_w[...], ylast,
                            preferred_element_type=jnp.float32) + lin_b[...]
                o_ref[...] = o.astype(o_ref.dtype)     # (O, Nc)

    return kernel


# ----------------------------------------------------------------------------
# Wrapper: builds the single fused pallas_call
# ----------------------------------------------------------------------------
def tcn_forward(inputs, kp, *, num_chunks=1, vmem_limit_bytes=32 * 1024 * 1024):
    """inputs: (N, C, L) with L == input_size.  Returns (N, output_size).

    num_chunks splits the batch across grid steps (set to 2 on v7x to shard
    the batch over its 2 TensorCores; keep 1 on single-TC v5e/v6e).
    """
    k = kp["kernel_size"]
    blocks = kp["blocks"]
    O = kp["lin_w"].shape[0]

    N = inputs.shape[0]
    assert N % num_chunks == 0, "num_chunks must divide the batch size"
    Nc = N // num_chunks

    # PyTorch: inputs.permute(0,2,1) -> conv channels = L, sequence = C.
    # Lay out as (channels, batch, seq) so batch folds onto the lane axis.
    x = jnp.transpose(inputs, (2, 0, 1)).astype(jnp.float32)   # (C_in0, N, Lseq)
    C_in0, _, Lseq = x.shape

    block_meta = tuple(
        dict(c_in=blk["wk1"].shape[2], c_out=blk["wk1"].shape[1],
             dilation=blk["dilation"], has_down=blk["wd"] is not None)
        for blk in blocks)
    C_max = max(max(m["c_in"], m["c_out"]) for m in block_meta)
    pad_max = max((k - 1) * m["dilation"] for m in block_meta)
    seg = pad_max + Lseq
    Wtot_chunk = Nc * seg
    Wout_chunk = Wtot_chunk - pad_max

    # Causal left-pad each sample ONCE in XLA and fold the batch onto lanes:
    # sample n occupies columns [n*seg, (n+1)*seg); its first pad_max columns
    # are zero.  This is exactly the in-kernel scratch layout, so the kernel
    # never re-stages the input.
    xp = jnp.pad(x, ((0, 0), (0, 0), (pad_max, 0))).reshape(C_in0, N * seg)

    # 1.0 at activation columns of the output frame, 0.0 at per-sample pad cols.
    cols = jnp.arange(Wout_chunk)
    mask = (((cols + pad_max) % seg) >= pad_max).astype(jnp.float32).reshape(1, Wout_chunk)

    def full_spec(a):  # whole array resident in VMEM, same block every grid step
        return pl.BlockSpec(a.shape, lambda b, _n=a.ndim: (0,) * _n)

    args = [xp, mask]
    in_specs = [
        # TODO(synk): for num_chunks > 1 the lane chunk (Nc*seg) should be a
        # multiple of 128 (pad the batch) to satisfy the (8,128) tiling rule.
        pl.BlockSpec((C_in0, Wtot_chunk), lambda b: (0, b)),
        full_spec(mask),
    ]
    for blk in blocks:
        for name in ("wk1", "bc1", "wk2", "bc2"):
            args.append(blk[name]); in_specs.append(full_spec(blk[name]))
        if blk["wd"] is not None:
            for name in ("wd", "bd"):
                args.append(blk[name]); in_specs.append(full_spec(blk[name]))
    args += [kp["lin_w"], kp["lin_bc"]]
    in_specs += [full_spec(kp["lin_w"]), full_spec(kp["lin_bc"])]

    kernel = _make_tcn_kernel(block_meta, k, Lseq, pad_max, seg, Nc, C_max)
    out = pl.pallas_call(
        kernel,
        out_shape=jax.ShapeDtypeStruct((O, N), jnp.float32),
        grid=(num_chunks,),
        in_specs=in_specs,
        out_specs=pl.BlockSpec((O, Nc), lambda b: (0, b)),
        scratch_shapes=[pltpu.VMEM((C_max, Wtot_chunk), jnp.float32),   # A
                        pltpu.VMEM((C_max, Wtot_chunk), jnp.float32)],  # B
        compiler_params=pltpu.CompilerParams(
            dimension_semantics=("parallel",),       # batch chunks shard across TCs (v7x)
            vmem_limit_bytes=vmem_limit_bytes,
        ),
    )(*args)
    return jnp.transpose(out)    # (N, O)


# ----------------------------------------------------------------------------
# Deterministic parameter construction (PyTorch layout) + one-time kernel prep
# ----------------------------------------------------------------------------
def init_tcn_params(key, input_size, output_size, num_channels, kernel_size):
    # weight_norm(v) at this init has g == ||v||, so the effective conv weight
    # equals v; we materialize effective weights directly, normal(0, 0.01) per
    # TemporalBlock.init_weights.  Biases use small deterministic normals.
    blocks = []
    in_ch = input_size
    for i, out_ch in enumerate(num_channels):
        key, k1, k2, k3, k4, k5, k6 = jax.random.split(key, 7)
        blocks.append({
            "w1": 0.01 * jax.random.normal(k1, (out_ch, in_ch, kernel_size), jnp.float32),
            "b1": 0.01 * jax.random.normal(k2, (out_ch,), jnp.float32),
            "w2": 0.01 * jax.random.normal(k3, (out_ch, out_ch, kernel_size), jnp.float32),
            "b2": 0.01 * jax.random.normal(k4, (out_ch,), jnp.float32),
            "wd": (0.01 * jax.random.normal(k5, (out_ch, in_ch, 1), jnp.float32)
                   if in_ch != out_ch else None),
            "bd": (0.01 * jax.random.normal(k6, (out_ch,), jnp.float32)
                   if in_ch != out_ch else None),
            "dilation": 2 ** i,
        })
        in_ch = out_ch
    key, kl1, kl2 = jax.random.split(key, 3)
    return {
        "blocks": blocks,
        "lin_w": 0.1 * jax.random.normal(kl1, (output_size, num_channels[-1]), jnp.float32),
        "lin_b": 0.1 * jax.random.normal(kl2, (output_size,), jnp.float32),
        "kernel_size": kernel_size,
    }


def prepare_kernel_params(params):
    """One-time layout prep (per-tap stacked conv weights, column biases) so the
    fused kernel does no per-call transposes/reshapes."""
    blocks = []
    for blk in params["blocks"]:
        blocks.append({
            "wk1": jnp.transpose(blk["w1"], (2, 0, 1)),   # (k, C_out, C_in)
            "bc1": blk["b1"].reshape(-1, 1),
            "wk2": jnp.transpose(blk["w2"], (2, 0, 1)),   # (k, C_out, C_out)
            "bc2": blk["b2"].reshape(-1, 1),
            "wd": None if blk["wd"] is None else blk["wd"][:, :, 0],
            "bd": None if blk["bd"] is None else blk["bd"].reshape(-1, 1),
            "dilation": blk["dilation"],
        })
    return {
        "blocks": blocks,
        "lin_w": params["lin_w"],
        "lin_bc": params["lin_b"].reshape(-1, 1),
        "kernel_size": params["kernel_size"],
    }


# ----------------------------------------------------------------------------
# Pure-JAX (XLA) reference for correctness checking
# ----------------------------------------------------------------------------
def tcn_reference(inputs, params):
    k = params["kernel_size"]
    x = jnp.transpose(inputs, (0, 2, 1))                  # (N, L, C) = (N, chan, seq)

    def conv(h, w, b, dil, p):
        y = lax.conv_general_dilated(
            h, w, window_strides=(1,), padding=[(p, 0)], rhs_dilation=(dil,),
            dimension_numbers=("NCH", "OIH", "NCH"),
            precision=lax.Precision.HIGHEST)
        return y + b[None, :, None]

    for blk in params["blocks"]:
        d = blk["dilation"]
        pad = (k - 1) * d
        h = jax.nn.relu(conv(x, blk["w1"], blk["b1"], d, pad))
        h = jax.nn.relu(conv(h, blk["w2"], blk["b2"], d, pad))
        res = x if blk["wd"] is None else conv(x, blk["wd"], blk["bd"], 1, 0)
        x = jax.nn.relu(h + res)
    y_last = x[:, :, -1]                                  # (N, C_last)
    return jnp.dot(y_last, params["lin_w"].T, precision=lax.Precision.HIGHEST) + params["lin_b"]


# ----------------------------------------------------------------------------
if __name__ == "__main__":
    # inputs: (N, C, L); after the module's permute, conv in_channels == L ==
    # input_size and the sequence length == C.
    N, C, L = 2, 16, 8
    input_size = L
    output_size = 5
    num_channels = [8, 16, 32]   # dilations 1, 2, 4; first block uses identity residual
    kernel_size = 2
    dropout = 0.1                # identity at inference

    key = jax.random.PRNGKey(0)
    key, kin = jax.random.split(key)
    inputs = jax.random.normal(kin, (N, C, L), jnp.float32)

    params = init_tcn_params(key, input_size, output_size, num_channels, kernel_size)
    kparams = prepare_kernel_params(params)

    fwd = jax.jit(lambda x: tcn_forward(x, kparams, num_chunks=1))
    out = jax.block_until_ready(fwd(inputs))
    assert out.shape == (N, output_size), out.shape

    ref = jax.block_until_ready(tcn_reference(inputs, params))
    assert jnp.allclose(out, ref, rtol=1e-3, atol=1e-3), (out, ref)

    print("KERNEL_OK")
</pallas_src>

<mosaic_0001>
module attributes {stable_mosaic.version = 11 : i64} {
  func.func @kernel(%arg0: i32, %arg1: memref<8x40xf32, #tpu.memory_space<vmem>>, %arg2: memref<1x36xf32, #tpu.memory_space<vmem>>, %arg3: memref<2x8x8xf32, #tpu.memory_space<vmem>>, %arg4: memref<8x1xf32, #tpu.memory_space<vmem>>, %arg5: memref<2x8x8xf32, #tpu.memory_space<vmem>>, %arg6: memref<8x1xf32, #tpu.memory_space<vmem>>, %arg7: memref<2x16x8xf32, #tpu.memory_space<vmem>>, %arg8: memref<16x1xf32, #tpu.memory_space<vmem>>, %arg9: memref<2x16x16xf32, #tpu.memory_space<vmem>>, %arg10: memref<16x1xf32, #tpu.memory_space<vmem>>, %arg11: memref<16x8xf32, #tpu.memory_space<vmem>>, %arg12: memref<16x1xf32, #tpu.memory_space<vmem>>, %arg13: memref<2x32x16xf32, #tpu.memory_space<vmem>>, %arg14: memref<32x1xf32, #tpu.memory_space<vmem>>, %arg15: memref<2x32x32xf32, #tpu.memory_space<vmem>>, %arg16: memref<32x1xf32, #tpu.memory_space<vmem>>, %arg17: memref<32x16xf32, #tpu.memory_space<vmem>>, %arg18: memref<32x1xf32, #tpu.memory_space<vmem>>, %arg19: memref<5x32xf32, #tpu.memory_space<vmem>>, %arg20: memref<5x1xf32, #tpu.memory_space<vmem>>, %arg21: memref<5x2xf32, #tpu.memory_space<vmem>>, %arg22: memref<32x40xf32, #tpu.memory_space<vmem>>, %arg23: memref<32x40xf32, #tpu.memory_space<vmem>>) attributes {dimension_semantics = [#tpu.dimension_semantics<parallel>], iteration_bounds = array<i64: 1>, scalar_prefetch = 0 : i64, scratch_operands = 2 : i64, tpu.core_type = #tpu.core_type<tc>, window_params = [{transform_indices = @transform_0, window_bounds = array<i64: 8, 40>}, {pipeline_mode = #tpu.pipeline_mode<synchronous>, transform_indices = @transform_1, window_bounds = array<i64: 1, 36>}, {pipeline_mode = #tpu.pipeline_mode<synchronous>, transform_indices = @transform_2, window_bounds = array<i64: 2, 8, 8>}, {pipeline_mode = #tpu.pipeline_mode<synchronous>, transform_indices = @transform_3, window_bounds = array<i64: 8, 1>}, {pipeline_mode = #tpu.pipeline_mode<synchronous>, transform_indices = @transform_4, window_bounds = array<i64: 2, 8, 8>}, {pipeline_mode = #tpu.pipeline_mode<synchronous>, transform_indices = @transform_5, window_bounds = array<i64: 8, 1>}, {pipeline_mode = #tpu.pipeline_mode<synchronous>, transform_indices = @transform_6, window_bounds = array<i64: 2, 16, 8>}, {pipeline_mode = #tpu.pipeline_mode<synchronous>, transform_indices = @transform_7, window_bounds = array<i64: 16, 1>}, {pipeline_mode = #tpu.pipeline_mode<synchronous>, transform_indices = @transform_8, window_bounds = array<i64: 2, 16, 16>}, {pipeline_mode = #tpu.pipeline_mode<synchronous>, transform_indices = @transform_9, window_bounds = array<i64: 16, 1>}, {pipeline_mode = #tpu.pipeline_mode<synchronous>, transform_indices = @transform_10, window_bounds = array<i64: 16, 8>}, {pipeline_mode = #tpu.pipeline_mode<synchronous>, transform_indices = @transform_11, window_bounds = array<i64: 16, 1>}, {pipeline_mode = #tpu.pipeline_mode<synchronous>, transform_indices = @transform_12, window_bounds = array<i64: 2, 32, 16>}, {pipeline_mode = #tpu.pipeline_mode<synchronous>, transform_indices = @transform_13, window_bounds = array<i64: 32, 1>}, {pipeline_mode = #tpu.pipeline_mode<synchronous>, transform_indices = @transform_14, window_bounds = array<i64: 2, 32, 32>}, {pipeline_mode = #tpu.pipeline_mode<synchronous>, transform_indices = @transform_15, window_bounds = array<i64: 32, 1>}, {pipeline_mode = #tpu.pipeline_mode<synchronous>, transform_indices = @transform_16, window_bounds = array<i64: 32, 16>}, {pipeline_mode = #tpu.pipeline_mode<synchronous>, transform_indices = @transform_17, window_bounds = array<i64: 32, 1>}, {pipeline_mode = #tpu.pipeline_mode<synchronous>, transform_indices = @transform_18, window_bounds = array<i64: 5, 32>}, {pipeline_mode = #tpu.pipeline_mode<synchronous>, transform_indices = @transform_19, window_bounds = array<i64: 5, 1>}, {transform_indices = @transform_20, window_bounds = array<i64: 5, 2>}]} {
    %cst = arith.constant 0.000000e+00 : f32
    %0 = vector.broadcast %cst : f32 to vector<32x4xf32>
    %c0 = arith.constant 0 : index
    %c0_0 = arith.constant 0 : index
    %1 = vector.load %arg22[%c0, %c0_0] : memref<32x40xf32, #tpu.memory_space<vmem>>, vector<32x4xf32>
    tpu.vector_store %arg22[%c0, %c0_0], %0 {strides = array<i32>} : memref<32x40xf32, #tpu.memory_space<vmem>>, vector<32x4xf32>,
    %c0_1 = arith.constant 0 : index
    %c0_2 = arith.constant 0 : index
    %2 = vector.load %arg23[%c0_1, %c0_2] : memref<32x40xf32, #tpu.memory_space<vmem>>, vector<32x4xf32>
    tpu.vector_store %arg23[%c0_1, %c0_2], %0 {strides = array<i32>} : memref<32x40xf32, #tpu.memory_space<vmem>>, vector<32x4xf32>,
    %c0_3 = arith.constant 0 : index
    %c0_4 = arith.constant 0 : index
    %3 = vector.load %arg2[%c0_3, %c0_4] : memref<1x36xf32, #tpu.memory_space<vmem>>, vector<1x36xf32>
    %cst_5 = arith.constant 0.000000e+00 : f32
    %4 = vector.broadcast %cst_5 : f32 to vector<8x36xf32>
    %c0_6 = arith.constant 0 : index
    %c3 = arith.constant 3 : index
    %5 = vector.load %arg1[%c0_6, %c3] : memref<8x40xf32, #tpu.memory_space<vmem>>, vector<8x36xf32>
    %c0_7 = arith.constant 0 : index
    %c0_8 = arith.constant 0 : index
    %c0_9 = arith.constant 0 : index
    %6 = vector.load %arg3[%c0_7, %c0_8, %c0_9] : memref<2x8x8xf32, #tpu.memory_space<vmem>>, vector<1x8x8xf32>
    %7 = vector.shape_cast %6 : vector<1x8x8xf32> to vector<8x8xf32>
    %cst_10 = arith.constant dense<0.000000e+00> : vector<8x36xf32>
    %8 = tpu.matmul %7, %5, %cst_10 {dimension_numbers = #tpu.dot_dimension_numbers<[1], [0], [0], [1], [0, 0, 1, 1], [], []>} : vector<8x8xf32>, vector<8x36xf32>, vector<8x36xf32> -> vector<8x36xf32>
    %9 = arith.addf %4, %8 : vector<8x36xf32>
    %c0_11 = arith.constant 0 : index
    %c4 = arith.constant 4 : index
    %10 = vector.load %arg1[%c0_11, %c4] : memref<8x40xf32, #tpu.memory_space<vmem>>, vector<8x36xf32>
    %c1 = arith.constant 1 : index
    %c0_12 = arith.constant 0 : index
    %c0_13 = arith.constant 0 : index
    %11 = vector.load %arg3[%c1, %c0_12, %c0_13] : memref<2x8x8xf32, #tpu.memory_space<vmem>>, vector<1x8x8xf32>
    %12 = vector.shape_cast %11 : vector<1x8x8xf32> to vector<8x8xf32>
    %cst_14 = arith.constant dense<0.000000e+00> : vector<8x36xf32>
    %13 = tpu.matmul %12, %10, %cst_14 {dimension_numbers = #tpu.dot_dimension_numbers<[1], [0], [0], [1], [0, 0, 1, 1], [], []>} : vector<8x8xf32>, vector<8x36xf32>, vector<8x36xf32> -> vector<8x36xf32>
    %14 = arith.addf %9, %13 : vector<8x36xf32>
    %c0_15 = arith.constant 0 : index
    %c0_16 = arith.constant 0 : index
    %15 = vector.load %arg4[%c0_15, %c0_16] : memref<8x1xf32, #tpu.memory_space<vmem>>, vector<8x1xf32>
    %16 = vector.broadcast %15 : vector<8x1xf32> to vector<8x36xf32>
    %17 = arith.addf %14, %16 : vector<8x36xf32>
    %cst_17 = arith.constant 0.000000e+00 : f32
    %18 = vector.broadcast %cst_17 : f32 to vector<8x36xf32>
    %19 = arith.maximumf %17, %18 : vector<8x36xf32>
    %20 = vector.broadcast %3 : vector<1x36xf32> to vector<8x36xf32>
    %21 = arith.mulf %19, %20 : vector<8x36xf32>
    %c0_18 = arith.constant 0 : index
    %c4_19 = arith.constant 4 : index
    %22 = vector.load %arg23[%c0_18, %c4_19] : memref<32x40xf32, #tpu.memory_space<vmem>>, vector<8x36xf32>
    tpu.vector_store %arg23[%c0_18, %c4_19], %21 {strides = array<i32>} : memref<32x40xf32, #tpu.memory_space<vmem>>, vector<8x36xf32>,
    %cst_20 = arith.constant 0.000000e+00 : f32
    %23 = vector.broadcast %cst_20 : f32 to vector<8x36xf32>
    %c0_21 = arith.constant 0 : index
    %c3_22 = arith.constant 3 : index
    %24 = vector.load %arg23[%c0_21, %c3_22] : memref<32x40xf32, #tpu.memory_space<vmem>>, vector<8x36xf32>
    %c0_23 = arith.constant 0 : index
    %c0_24 = arith.constant 0 : index
    %c0_25 = arith.constant 0 : index
    %25 = vector.load %arg5[%c0_23, %c0_24, %c0_25] : memref<2x8x8xf32, #tpu.memory_space<vmem>>, vector<1x8x8xf32>
    %26 = vector.shape_cast %25 : vector<1x8x8xf32> to vector<8x8xf32>
    %cst_26 = arith.constant dense<0.000000e+00> : vector<8x36xf32>
    %27 = tpu.matmul %26, %24, %cst_26 {dimension_numbers = #tpu.dot_dimension_numbers<[1], [0], [0], [1], [0, 0, 1, 1], [], []>} : vector<8x8xf32>, vector<8x36xf32>, vector<8x36xf32> -> vector<8x36xf32>
    %28 = arith.addf %23, %27 : vector<8x36xf32>
    %c0_27 = arith.constant 0 : index
    %c4_28 = arith.constant 4 : index
    %29 = vector.load %arg23[%c0_27, %c4_28] : memref<32x40xf32, #tpu.memory_space<vmem>>, vector<8x36xf32>
    %c1_29 = arith.constant 1 : index
    %c0_30 = arith.constant 0 : index
    %c0_31 = arith.constant 0 : index
    %30 = vector.load %arg5[%c1_29, %c0_30, %c0_31] : memref<2x8x8xf32, #tpu.memory_space<vmem>>, vector<1x8x8xf32>
    %31 = vector.shape_cast %30 : vector<1x8x8xf32> to vector<8x8xf32>
    %cst_32 = arith.constant dense<0.000000e+00> : vector<8x36xf32>
    %32 = tpu.matmul %31, %29, %cst_32 {dimension_numbers = #tpu.dot_dimension_numbers<[1], [0], [0], [1], [0, 0, 1, 1], [], []>} : vector<8x8xf32>, vector<8x36xf32>, vector<8x36xf32> -> vector<8x36xf32>
    %33 = arith.addf %28, %32 : vector<8x36xf32>
    %c0_33 = arith.constant 0 : index
    %c0_34 = arith.constant 0 : index
    %34 = vector.load %arg6[%c0_33, %c0_34] : memref<8x1xf32, #tpu.memory_space<vmem>>, vector<8x1xf32>
    %35 = vector.broadcast %34 : vector<8x1xf32> to vector<8x36xf32>
    %36 = arith.addf %33, %35 : vector<8x36xf32>
    %cst_35 = arith.constant 0.000000e+00 : f32
    %37 = vector.broadcast %cst_35 : f32 to vector<8x36xf32>
    %38 = arith.maximumf %36, %37 : vector<8x36xf32>
    %c0_36 = arith.constant 0 : index
    %c4_37 = arith.constant 4 : index
    %39 = vector.load %arg1[%c0_36, %c4_37] : memref<8x40xf32, #tpu.memory_space<vmem>>, vector<8x36xf32>
    %40 = arith.addf %38, %39 : vector<8x36xf32>
    %cst_38 = arith.constant 0.000000e+00 : f32
    %41 = vector.broadcast %cst_38 : f32 to vector<8x36xf32>
    %42 = arith.maximumf %40, %41 : vector<8x36xf32>
    %43 = vector.broadcast %3 : vector<1x36xf32> to vector<8x36xf32>
    %44 = arith.mulf %42, %43 : vector<8x36xf32>
    %c0_39 = arith.constant 0 : index
    %c4_40 = arith.constant 4 : index
    %45 = vector.load %arg22[%c0_39, %c4_40] : memref<32x40xf32, #tpu.memory_space<vmem>>, vector<8x36xf32>
    tpu.vector_store %arg22[%c0_39, %c4_40], %44 {strides = array<i32>} : memref<32x40xf32, #tpu.memory_space<vmem>>, vector<8x36xf32>,
    %cst_41 = arith.constant 0.000000e+00 : f32
    %46 = vector.broadcast %cst_41 : f32 to vector<16x36xf32>
    %c0_42 = arith.constant 0 : index
    %c2 = arith.constant 2 : index
    %47 = vector.load %arg22[%c0_42, %c2] : memref<32x40xf32, #tpu.memory_space<vmem>>, vector<8x36xf32>
    %c0_43 = arith.constant 0 : index
    %c0_44 = arith.constant 0 : index
    %c0_45 = arith.constant 0 : index
    %48 = vector.load %arg7[%c0_43, %c0_44, %c0_45] : memref<2x16x8xf32, #tpu.memory_space<vmem>>, vector<1x16x8xf32>
    %49 = vector.shape_cast %48 : vector<1x16x8xf32> to vector<16x8xf32>
    %cst_46 = arith.constant dense<0.000000e+00> : vector<16x36xf32>
    %50 = tpu.matmul %49, %47, %cst_46 {dimension_numbers = #tpu.dot_dimension_numbers<[1], [0], [0], [1], [0, 0, 1, 1], [], []>} : vector<16x8xf32>, vector<8x36xf32>, vector<16x36xf32> -> vector<16x36xf32>
    %51 = arith.addf %46, %50 : vector<16x36xf32>
    %c0_47 = arith.constant 0 : index
    %c4_48 = arith.constant 4 : index
    %52 = vector.load %arg22[%c0_47, %c4_48] : memref<32x40xf32, #tpu.memory_space<vmem>>, vector<8x36xf32>
    %c1_49 = arith.constant 1 : index
    %c0_50 = arith.constant 0 : index
    %c0_51 = arith.constant 0 : index
    %53 = vector.load %arg7[%c1_49, %c0_50, %c0_51] : memref<2x16x8xf32, #tpu.memory_space<vmem>>, vector<1x16x8xf32>
    %54 = vector.shape_cast %53 : vector<1x16x8xf32> to vector<16x8xf32>
    %cst_52 = arith.constant dense<0.000000e+00> : vector<16x36xf32>
    %55 = tpu.matmul %54, %52, %cst_52 {dimension_numbers = #tpu.dot_dimension_numbers<[1], [0], [0], [1], [0, 0, 1, 1], [], []>} : vector<16x8xf32>, vector<8x36xf32>, vector<16x36xf32> -> vector<16x36xf32>
    %56 = arith.addf %51, %55 : vector<16x36xf32>
    %c0_53 = arith.constant 0 : index
    %c0_54 = arith.constant 0 : index
    %57 = vector.load %arg8[%c0_53, %c0_54] : memref<16x1xf32, #tpu.memory_space<vmem>>, vector<16x1xf32>
    %58 = vector.broadcast %57 : vector<16x1xf32> to vector<16x36xf32>
    %59 = arith.addf %56, %58 : vector<16x36xf32>
    %cst_55 = arith.constant 0.000000e+00 : f32
    %60 = vector.broadcast %cst_55 : f32 to vector<16x36xf32>
    %61 = arith.maximumf %59, %60 : vector<16x36xf32>
    %62 = vector.broadcast %3 : vector<1x36xf32> to vector<16x36xf32>
    %63 = arith.mulf %61, %62 : vector<16x36xf32>
    %c0_56 = arith.constant 0 : index
    %c4_57 = arith.constant 4 : index
    %64 = vector.load %arg23[%c0_56, %c4_57] : memref<32x40xf32, #tpu.memory_space<vmem>>, vector<16x36xf32>
    tpu.vector_store %arg23[%c0_56, %c4_57], %63 {strides = array<i32>} : memref<32x40xf32, #tpu.memory_space<vmem>>, vector<16x36xf32>,
    %cst_58 = arith.constant 0.000000e+00 : f32
    %65 = vector.broadcast %cst_58 : f32 to vector<16x36xf32>
    %c0_59 = arith.constant 0 : index
    %c2_60 = arith.constant 2 : index
    %66 = vector.load %arg23[%c0_59, %c2_60] : memref<32x40xf32, #tpu.memory_space<vmem>>, vector<16x36xf32>
    %c0_61 = arith.constant 0 : index
    %c0_62 = arith.constant 0 : index
    %c0_63 = arith.constant 0 : index
    %67 = vector.load %arg9[%c0_61, %c0_62, %c0_63] : memref<2x16x16xf32, #tpu.memory_space<vmem>>, vector<1x16x16xf32>
    %68 = vector.shape_cast %67 : vector<1x16x16xf32> to vector<16x16xf32>
    %cst_64 = arith.constant dense<0.000000e+00> : vector<16x36xf32>
    %69 = tpu.matmul %68, %66, %cst_64 {dimension_numbers = #tpu.dot_dimension_numbers<[1], [0], [0], [1], [0, 0, 1, 1], [], []>} : vector<16x16xf32>, vector<16x36xf32>, vector<16x36xf32> -> vector<16x36xf32>
    %70 = arith.addf %65, %69 : vector<16x36xf32>
    %c0_65 = arith.constant 0 : index
    %c4_66 = arith.constant 4 : index
    %71 = vector.load %arg23[%c0_65, %c4_66] : memref<32x40xf32, #tpu.memory_space<vmem>>, vector<16x36xf32>
    %c1_67 = arith.constant 1 : index
    %c0_68 = arith.constant 0 : index
    %c0_69 = arith.constant 0 : index
    %72 = vector.load %arg9[%c1_67, %c0_68, %c0_69] : memref<2x16x16xf32, #tpu.memory_space<vmem>>, vector<1x16x16xf32>
    %73 = vector.shape_cast %72 : vector<1x16x16xf32> to vector<16x16xf32>
    %cst_70 = arith.constant dense<0.000000e+00> : vector<16x36xf32>
    %74 = tpu.matmul %73, %71, %cst_70 {dimension_numbers = #tpu.dot_dimension_numbers<[1], [0], [0], [1], [0, 0, 1, 1], [], []>} : vector<16x16xf32>, vector<16x36xf32>, vector<16x36xf32> -> vector<16x36xf32>
    %75 = arith.addf %70, %74 : vector<16x36xf32>
    %c0_71 = arith.constant 0 : index
    %c0_72 = arith.constant 0 : index
    %76 = vector.load %arg10[%c0_71, %c0_72] : memref<16x1xf32, #tpu.memory_space<vmem>>, vector<16x1xf32>
    %77 = vector.broadcast %76 : vector<16x1xf32> to vector<16x36xf32>
    %78 = arith.addf %75, %77 : vector<16x36xf32>
    %cst_73 = arith.constant 0.000000e+00 : f32
    %79 = vector.broadcast %cst_73 : f32 to vector<16x36xf32>
    %80 = arith.maximumf %78, %79 : vector<16x36xf32>
    %c0_74 = arith.constant 0 : index
    %c0_75 = arith.constant 0 : index
    %81 = vector.load %arg11[%c0_74, %c0_75] : memref<16x8xf32, #tpu.memory_space<vmem>>, vector<16x8xf32>
    %c0_76 = arith.constant 0 : index
    %c4_77 = arith.constant 4 : index
    %82 = vector.load %arg22[%c0_76, %c4_77] : memref<32x40xf32, #tpu.memory_space<vmem>>, vector<8x36xf32>
    %cst_78 = arith.constant dense<0.000000e+00> : vector<16x36xf32>
    %83 = tpu.matmul %81, %82, %cst_78 {dimension_numbers = #tpu.dot_dimension_numbers<[1], [0], [0], [1], [0, 0, 1, 1], [], []>} : vector<16x8xf32>, vector<8x36xf32>, vector<16x36xf32> -> vector<16x36xf32>
    %c0_79 = arith.constant 0 : index
    %c0_80 = arith.constant 0 : index
    %84 = vector.load %arg12[%c0_79, %c0_80] : memref<16x1xf32, #tpu.memory_space<vmem>>, vector<16x1xf32>
    %85 = vector.broadcast %84 : vector<16x1xf32> to vector<16x36xf32>
    %86 = arith.addf %83, %85 : vector<16x36xf32>
    %87 = arith.addf %80, %86 : vector<16x36xf32>
    %cst_81 = arith.constant 0.000000e+00 : f32
    %88 = vector.broadcast %cst_81 : f32 to vector<16x36xf32>
    %89 = arith.maximumf %87, %88 : vector<16x36xf32>
    %90 = vector.broadcast %3 : vector<1x36xf32> to vector<16x36xf32>
    %91 = arith.mulf %89, %90 : vector<16x36xf32>
    %c0_82 = arith.constant 0 : index
    %c4_83 = arith.constant 4 : index
    %92 = vector.load %arg22[%c0_82, %c4_83] : memref<32x40xf32, #tpu.memory_space<vmem>>, vector<16x36xf32>
    tpu.vector_store %arg22[%c0_82, %c4_83], %91 {strides = array<i32>} : memref<32x40xf32, #tpu.memory_space<vmem>>, vector<16x36xf32>,
    %cst_84 = arith.constant 0.000000e+00 : f32
    %93 = vector.broadcast %cst_84 : f32 to vector<32x36xf32>
    %c0_85 = arith.constant 0 : index
    %c0_86 = arith.constant 0 : index
    %94 = vector.load %arg22[%c0_85, %c0_86] : memref<32x40xf32, #tpu.memory_space<vmem>>, vector<16x36xf32>
    %c0_87 = arith.constant 0 : index
    %c0_88 = arith.constant 0 : index
    %c0_89 = arith.constant 0 : index
    %95 = vector.load %arg13[%c0_87, %c0_88, %c0_89] : memref<2x32x16xf32, #tpu.memory_space<vmem>>, vector<1x32x16xf32>
    %96 = vector.shape_cast %95 : vector<1x32x16xf32> to vector<32x16xf32>
    %cst_90 = arith.constant dense<0.000000e+00> : vector<32x36xf32>
    %97 = tpu.matmul %96, %94, %cst_90 {dimension_numbers = #tpu.dot_dimension_numbers<[1], [0], [0], [1], [0, 0, 1, 1], [], []>} : vector<32x16xf32>, vector<16x36xf32>, vector<32x36xf32> -> vector<32x36xf32>
    %98 = arith.addf %93, %97 : vector<32x36xf32>
    %c0_91 = arith.constant 0 : index
    %c4_92 = arith.constant 4 : index
    %99 = vector.load %arg22[%c0_91, %c4_92] : memref<32x40xf32, #tpu.memory_space<vmem>>, vector<16x36xf32>
    %c1_93 = arith.constant 1 : index
    %c0_94 = arith.constant 0 : index
    %c0_95 = arith.constant 0 : index
    %100 = vector.load %arg13[%c1_93, %c0_94, %c0_95] : memref<2x32x16xf32, #tpu.memory_space<vmem>>, vector<1x32x16xf32>
    %101 = vector.shape_cast %100 : vector<1x32x16xf32> to vector<32x16xf32>
    %cst_96 = arith.constant dense<0.000000e+00> : vector<32x36xf32>
    %102 = tpu.matmul %101, %99, %cst_96 {dimension_numbers = #tpu.dot_dimension_numbers<[1], [0], [0], [1], [0, 0, 1, 1], [], []>} : vector<32x16xf32>, vector<16x36xf32>, vector<32x36xf32> -> vector<32x36xf32>
    %103 = arith.addf %98, %102 : vector<32x36xf32>
    %c0_97 = arith.constant 0 : index
    %c0_98 = arith.constant 0 : index
    %104 = vector.load %arg14[%c0_97, %c0_98] : memref<32x1xf32, #tpu.memory_space<vmem>>, vector<32x1xf32>
    %105 = vector.broadcast %104 : vector<32x1xf32> to vector<32x36xf32>
    %106 = arith.addf %103, %105 : vector<32x36xf32>
    %cst_99 = arith.constant 0.000000e+00 : f32
    %107 = vector.broadcast %cst_99 : f32 to vector<32x36xf32>
    %108 = arith.maximumf %106, %107 : vector<32x36xf32>
    %109 = vector.broadcast %3 : vector<1x36xf32> to vector<32x36xf32>
    %110 = arith.mulf %108, %109 : vector<32x36xf32>
    %c0_100 = arith.constant 0 : index
    %c4_101 = arith.constant 4 : index
    %111 = vector.load %arg23[%c0_100, %c4_101] : memref<32x40xf32, #tpu.memory_space<vmem>>, vector<32x36xf32>
    tpu.vector_store %arg23[%c0_100, %c4_101], %110 {strides = array<i32>} : memref<32x40xf32, #tpu.memory_space<vmem>>, vector<32x36xf32>,
    %cst_102 = arith.constant 0.000000e+00 : f32
    %112 = vector.broadcast %cst_102 : f32 to vector<32x36xf32>
    %c0_103 = arith.constant 0 : index
    %c0_104 = arith.constant 0 : index
    %113 = vector.load %arg23[%c0_103, %c0_104] : memref<32x40xf32, #tpu.memory_space<vmem>>, vector<32x36xf32>
    %c0_105 = arith.constant 0 : index
    %c0_106 = arith.constant 0 : index
    %c0_107 = arith.constant 0 : index
    %114 = vector.load %arg15[%c0_105, %c0_106, %c0_107] : memref<2x32x32xf32, #tpu.memory_space<vmem>>, vector<1x32x32xf32>
    %115 = vector.shape_cast %114 : vector<1x32x32xf32> to vector<32x32xf32>
    %cst_108 = arith.constant dense<0.000000e+00> : vector<32x36xf32>
    %116 = tpu.matmul %115, %113, %cst_108 {dimension_numbers = #tpu.dot_dimension_numbers<[1], [0], [0], [1], [0, 0, 1, 1], [], []>} : vector<32x32xf32>, vector<32x36xf32>, vector<32x36xf32> -> vector<32x36xf32>
    %117 = arith.addf %112, %116 : vector<32x36xf32>
    %c0_109 = arith.constant 0 : index
    %c4_110 = arith.constant 4 : index
    %118 = vector.load %arg23[%c0_109, %c4_110] : memref<32x40xf32, #tpu.memory_space<vmem>>, vector<32x36xf32>
    %c1_111 = arith.constant 1 : index
    %c0_112 = arith.constant 0 : index
    %c0_113 = arith.constant 0 : index
    %119 = vector.load %arg15[%c1_111, %c0_112, %c0_113] : memref<2x32x32xf32, #tpu.memory_space<vmem>>, vector<1x32x32xf32>
    %120 = vector.shape_cast %119 : vector<1x32x32xf32> to vector<32x32xf32>
    %cst_114 = arith.constant dense<0.000000e+00> : vector<32x36xf32>
    %121 = tpu.matmul %120, %118, %cst_114 {dimension_numbers = #tpu.dot_dimension_numbers<[1], [0], [0], [1], [0, 0, 1, 1], [], []>} : vector<32x32xf32>, vector<32x36xf32>, vector<32x36xf32> -> vector<32x36xf32>
    %122 = arith.addf %117, %121 : vector<32x36xf32>
    %c0_115 = arith.constant 0 : index
    %c0_116 = arith.constant 0 : index
    %123 = vector.load %arg16[%c0_115, %c0_116] : memref<32x1xf32, #tpu.memory_space<vmem>>, vector<32x1xf32>
    %124 = vector.broadcast %123 : vector<32x1xf32> to vector<32x36xf32>
    %125 = arith.addf %122, %124 : vector<32x36xf32>
    %cst_117 = arith.constant 0.000000e+00 : f32
    %126 = vector.broadcast %cst_117 : f32 to vector<32x36xf32>
    %127 = arith.maximumf %125, %126 : vector<32x36xf32>
    %c0_118 = arith.constant 0 : index
    %c0_119 = arith.constant 0 : index
    %128 = vector.load %arg17[%c0_118, %c0_119] : memref<32x16xf32, #tpu.memory_space<vmem>>, vector<32x16xf32>
    %c0_120 = arith.constant 0 : index
    %c4_121 = arith.constant 4 : index
    %129 = vector.load %arg22[%c0_120, %c4_121] : memref<32x40xf32, #tpu.memory_space<vmem>>, vector<16x36xf32>
    %cst_122 = arith.constant dense<0.000000e+00> : vector<32x36xf32>
    %130 = tpu.matmul %128, %129, %cst_122 {dimension_numbers = #tpu.dot_dimension_numbers<[1], [0], [0], [1], [0, 0, 1, 1], [], []>} : vector<32x16xf32>, vector<16x36xf32>, vector<32x36xf32> -> vector<32x36xf32>
    %c0_123 = arith.constant 0 : index
    %c0_124 = arith.constant 0 : index
    %131 = vector.load %arg18[%c0_123, %c0_124] : memref<32x1xf32, #tpu.memory_space<vmem>>, vector<32x1xf32>
    %132 = vector.broadcast %131 : vector<32x1xf32> to vector<32x36xf32>
    %133 = arith.addf %130, %132 : vector<32x36xf32>
    %134 = arith.addf %127, %133 : vector<32x36xf32>
    %cst_125 = arith.constant 0.000000e+00 : f32
    %135 = vector.broadcast %cst_125 : f32 to vector<32x36xf32>
    %136 = arith.maximumf %134, %135 : vector<32x36xf32>
    %137 = vector.extract_strided_slice %136 {offsets = [0, 15], sizes = [32, 1], strides = [1, 1]} : vector<32x36xf32> to vector<32x1xf32>
    %138 = vector.extract_strided_slice %136 {offsets = [0, 35], sizes = [32, 1], strides = [1, 1]} : vector<32x36xf32> to vector<32x1xf32>
    %139 = tpu.concatenate %137, %138 in 1 : vector<32x1xf32>, vector<32x1xf32> -> vector<32x2xf32>
    %c0_126 = arith.constant 0 : index
    %c0_127 = arith.constant 0 : index
    %140 = vector.load %arg19[%c0_126, %c0_127] : memref<5x32xf32, #tpu.memory_space<vmem>>, vector<5x32xf32>
    %cst_128 = arith.constant dense<0.000000e+00> : vector<5x2xf32>
    %141 = tpu.matmul %140, %139, %cst_128 {dimension_numbers = #tpu.dot_dimension_numbers<[1], [0], [0], [1], [0, 0, 1, 1], [], []>} : vector<5x32xf32>, vector<32x2xf32>, vector<5x2xf32> -> vector<5x2xf32>
    %c0_129 = arith.constant 0 : index
    %c0_130 = arith.constant 0 : index
    %142 = vector.load %arg20[%c0_129, %c0_130] : memref<5x1xf32, #tpu.memory_space<vmem>>, vector<5x1xf32>
    %143 = vector.broadcast %142 : vector<5x1xf32> to vector<5x2xf32>
    %144 = arith.addf %141, %143 : vector<5x2xf32>
    %c0_131 = arith.constant 0 : index
    %c0_132 = arith.constant 0 : index
    %145 = vector.load %arg21[%c0_131, %c0_132] : memref<5x2xf32, #tpu.memory_space<vmem>>, vector<5x2xf32>
    tpu.vector_store %arg21[%c0_131, %c0_132], %144 {strides = array<i32>} : memref<5x2xf32, #tpu.memory_space<vmem>>, vector<5x2xf32>,
    return
  }
  func.func @transform_0(%arg0: i32) -> (i32, i32) {
    %c0_i32 = arith.constant 0 : i32
    %c0_i32_0 = arith.constant 0 : i32
    return %c0_i32, %arg0 : i32, i32
  }
  func.func @transform_1(%arg0: i32) -> (i32, i32) {
    %c0_i32 = arith.constant 0 : i32
    %c0_i32_0 = arith.constant 0 : i32
    %c0_i32_1 = arith.constant 0 : i32
    return %c0_i32, %c0_i32_0 : i32, i32
  }
  func.func @transform_2(%arg0: i32) -> (i32, i32, i32) {
    %c0_i32 = arith.constant 0 : i32
    %c0_i32_0 = arith.constant 0 : i32
    %c0_i32_1 = arith.constant 0 : i32
    %c0_i32_2 = arith.constant 0 : i32
    return %c0_i32, %c0_i32_0, %c0_i32_1 : i32, i32, i32
  }
  func.func @transform_3(%arg0: i32) -> (i32, i32) {
    %c0_i32 = arith.constant 0 : i32
    %c0_i32_0 = arith.constant 0 : i32
    %c0_i32_1 = arith.constant 0 : i32
    return %c0_i32, %c0_i32_0 : i32, i32
  }
  func.func @transform_4(%arg0: i32) -> (i32, i32, i32) {
    %c0_i32 = arith.constant 0 : i32
    %c0_i32_0 = arith.constant 0 : i32
    %c0_i32_1 = arith.constant 0 : i32
    %c0_i32_2 = arith.constant 0 : i32
    return %c0_i32, %c0_i32_0, %c0_i32_1 : i32, i32, i32
  }
  func.func @transform_5(%arg0: i32) -> (i32, i32) {
    %c0_i32 = arith.constant 0 : i32
    %c0_i32_0 = arith.constant 0 : i32
    %c0_i32_1 = arith.constant 0 : i32
    return %c0_i32, %c0_i32_0 : i32, i32
  }
  func.func @transform_6(%arg0: i32) -> (i32, i32, i32) {
    %c0_i32 = arith.constant 0 : i32
    %c0_i32_0 = arith.constant 0 : i32
    %c0_i32_1 = arith.constant 0 : i32
    %c0_i32_2 = arith.constant 0 : i32
    return %c0_i32, %c0_i32_0, %c0_i32_1 : i32, i32, i32
  }
  func.func @transform_7(%arg0: i32) -> (i32, i32) {
    %c0_i32 = arith.constant 0 : i32
    %c0_i32_0 = arith.constant 0 : i32
    %c0_i32_1 = arith.constant 0 : i32
    return %c0_i32, %c0_i32_0 : i32, i32
  }
  func.func @transform_8(%arg0: i32) -> (i32, i32, i32) {
    %c0_i32 = arith.constant 0 : i32
    %c0_i32_0 = arith.constant 0 : i32
    %c0_i32_1 = arith.constant 0 : i32
    %c0_i32_2 = arith.constant 0 : i32
    return %c0_i32, %c0_i32_0, %c0_i32_1 : i32, i32, i32
  }
  func.func @transform_9(%arg0: i32) -> (i32, i32) {
    %c0_i32 = arith.constant 0 : i32
    %c0_i32_0 = arith.constant 0 : i32
    %c0_i32_1 = arith.constant 0 : i32
    return %c0_i32, %c0_i32_0 : i32, i32
  }
  func.func @transform_10(%arg0: i32) -> (i32, i32) {
    %c0_i32 = arith.constant 0 : i32
    %c0_i32_0 = arith.constant 0 : i32
    %c0_i32_1 = arith.constant 0 : i32
    return %c0_i32, %c0_i32_0 : i32, i32
  }
  func.func @transform_11(%arg0: i32) -> (i32, i32) {
    %c0_i32 = arith.constant 0 : i32
    %c0_i32_0 = arith.constant 0 : i32
    %c0_i32_1 = arith.constant 0 : i32
    return %c0_i32, %c0_i32_0 : i32, i32
  }
  func.func @transform_12(%arg0: i32) -> (i32, i32, i32) {
    %c0_i32 = arith.constant 0 : i32
    %c0_i32_0 = arith.constant 0 : i32
    %c0_i32_1 = arith.constant 0 : i32
    %c0_i32_2 = arith.constant 0 : i32
    return %c0_i32, %c0_i32_0, %c0_i32_1 : i32, i32, i32
  }
  func.func @transform_13(%arg0: i32) -> (i32, i32) {
    %c0_i32 = arith.constant 0 : i32
    %c0_i32_0 = arith.constant 0 : i32
    %c0_i32_1 = arith.constant 0 : i32
    return %c0_i32, %c0_i32_0 : i32, i32
  }
  func.func @transform_14(%arg0: i32) -> (i32, i32, i32) {
    %c0_i32 = arith.constant 0 : i32
    %c0_i32_0 = arith.constant 0 : i32
    %c0_i32_1 = arith.constant 0 : i32
    %c0_i32_2 = arith.constant 0 : i32
    return %c0_i32, %c0_i32_0, %c0_i32_1 : i32, i32, i32
  }
  func.func @transform_15(%arg0: i32) -> (i32, i32) {
    %c0_i32 = arith.constant 0 : i32
    %c0_i32_0 = arith.constant 0 : i32
    %c0_i32_1 = arith.constant 0 : i32
    return %c0_i32, %c0_i32_0 : i32, i32
  }
  func.func @transform_16(%arg0: i32) -> (i32, i32) {
    %c0_i32 = arith.constant 0 : i32
    %c0_i32_0 = arith.constant 0 : i32
    %c0_i32_1 = arith.constant 0 : i32
    return %c0_i32, %c0_i32_0 : i32, i32
  }
  func.func @transform_17(%arg0: i32) -> (i32, i32) {
    %c0_i32 = arith.constant 0 : i32
    %c0_i32_0 = arith.constant 0 : i32
    %c0_i32_1 = arith.constant 0 : i32
    return %c0_i32, %c0_i32_0 : i32, i32
  }
  func.func @transform_18(%arg0: i32) -> (i32, i32) {
    %c0_i32 = arith.constant 0 : i32
    %c0_i32_0 = arith.constant 0 : i32
    %c0_i32_1 = arith.constant 0 : i32
    return %c0_i32, %c0_i32_0 : i32, i32
  }
  func.func @transform_19(%arg0: i32) -> (i32, i32) {
    %c0_i32 = arith.constant 0 : i32
    %c0_i32_0 = arith.constant 0 : i32
    %c0_i32_1 = arith.constant 0 : i32
    return %c0_i32, %c0_i32_0 : i32, i32
  }
  func.func @transform_20(%arg0: i32) -> (i32, i32) {
    %c0_i32 = arith.constant 0 : i32
    %c0_i32_0 = arith.constant 0 : i32
    return %c0_i32, %arg0 : i32, i32
  }
}

</mosaic_0001>

<bundles_post_ra>
// kernel: _lambda_.1
= control target key start
LH: loop header
LB: loop body
LE: loop exit
PB: predicated region body
PF: predicated region fallthrough
CT: control target
= control target key end

     0   :  { %s3064_s0 = inlined_call_operand.vmem [shape: f32[8,40], index: 0, kind: input, shape index: {}]   ;;  %s3065_s1 = inlined_call_operand.vmem [shape: f32[1,36], index: 1, kind: input, shape index: {}]   ;;  %s3066_s2 = inlined_call_operand.vmem [shape: f32[2,8,8], index: 2, kind: input, shape index: {}]   ;;  %s3067_s3 = inlined_call_operand.vmem [shape: f32[8,1], index: 3, kind: input, shape index: {}]   ;;  %s3068_s4 = inlined_call_operand.hbm [shape: f32[2,8,8], index: 4, kind: input, shape index: {}]   ;;  %s3069_s5 = inlined_call_operand.hbm [shape: f32[8,1], index: 5, kind: input, shape index: {}]   ;;  %s3070_s6 = inlined_call_operand.vmem [shape: f32[2,16,8], index: 6, kind: input, shape index: {}]   ;;  %s3071_s7 = inlined_call_operand.hbm [shape: f32[16,1], index: 7, kind: input, shape index: {}]   ;;  %s3072_s8 = inlined_call_operand.vmem [shape: f32[2,16,16], index: 8, kind: input, shape index: {}]   ;;  %s3073_s9 = inlined_call_operand.hbm [shape: f32[16,1], index: 9, kind: input, shape index: {}]   ;;  %s3074_s10 = inlined_call_operand.hbm [shape: f32[16,8], index: 10, kind: input, shape index: {}]   ;;  %s3075_s11 = inlined_call_operand.hbm [shape: f32[16,1], index: 11, kind: input, shape index: {}]   ;;  %s3076_s12 = inlined_call_operand.vmem [shape: f32[2,32,16], index: 12, kind: input, shape index: {}]   ;;  %s3077_s13 = inlined_call_operand.hbm [shape: f32[32,1], index: 13, kind: input, shape index: {}]   ;;  %s3078_s14 = inlined_call_operand.hbm [shape: f32[2,32,32], index: 14, kind: input, shape index: {}]   ;;  %s3079_s15 = inlined_call_operand.hbm [shape: f32[32,1], index: 15, kind: input, shape index: {}]   ;;  %s3080_s16 = inlined_call_operand.hbm [shape: f32[32,16], index: 16, kind: input, shape index: {}]   ;;  %s3081_s17 = inlined_call_operand.hbm [shape: f32[32,1], index: 17, kind: input, shape index: {}]   ;;  %s3082_s18 = inlined_call_operand.hbm [shape: f32[5,32], index: 18, kind: input, shape index: {}]   ;;  %s3083_s19 = inlined_call_operand.hbm [shape: f32[5,1], index: 19, kind: input, shape index: {}]   ;;  %s3084_s20 = inlined_call_operand.vmem [shape: f32[5,2], index: 20, kind: output, shape index: {}]  }
   0x1   :  { %3087 = sst [smem:[#allocation31_spill]] %s3064_s0 }
   0x2   :  { %3088 = sst [smem:[#allocation32_spill]] %s3065_s1 }
   0x3   :  { %3089 = sst [smem:[#allocation33_spill]] %s3066_s2 }
   0x4   :  { %3090 = sst [smem:[#allocation34_spill]] %s3067_s3 }
   0x5   :  { %3091 = sst [smem:[#allocation35_spill]] %s3068_s4 }
   0x6   :  { %25 = vsyncpa [#allocation5], 0 }
   0x7   :  { %26 = vsyncpa [#allocation7], 0 }
   0x8   :  { %27 = vsyncpa [#allocation10], 0 }
   0x9   :  { %28 = vsyncpa [#allocation13], 0 }
   0xa   :  { %29 = vsyncpa [#allocation16], 0 }
   0xb   :  { %30 = vsyncpa [#allocation19], 0 }
   0xc   :  { %31 = vsyncpa [#allocation22], 0  ;;  %s2573_s1 = smov [#allocation6]   ;;  %s2273_s2 = scalar_lea.hbm %s3069_s5, 128 }
   0xd   :  { %s58_s22 = sshll.u32 %s2573_s1, 4  ;;  %p2274_p0 = scmp.ne.s32.totalorder %s3069_s5, %s2273_s2  ;;  %s59_s22 = int_to_ptr.vmem [resolvable:$true] %s58_s22 }
   0xe   :  { %p2277_p1 = scmp.lt.u32.totalorder %s2273_s2, %s3069_s5 }
  0x10   :  { %p2279_p2 = pnand %p2277_p1, %p2274_p0 }
  0x12   :  { %2282 = shalt.err (!%p2279_p2)
}
  0x13   :  { %s2283_s28 = scalar_lea.vmem %s59_s22, 128  ;;  %p2288_p4 = scmp.lt.s32.totalorder %s59_s22, %s59_s22 }
  0x14   :  { %p2284_p3 = scmp.ne.s32.totalorder %s59_s22, %s2283_s28  ;;  %p2289_p5 = scmp.lt.s32.totalorder %s2283_s28, %s2283_s28 }
  0x16   :  { %p2290_p6 = por %p2289_p5, %p2288_p4 }
  0x18   :  { %p2291_p7 = pnand %p2290_p6, %p2284_p3 }
  0x1a   :  { %2294 = shalt.err (!%p2291_p7)
}
  0x1b   :  { %61 = dma.hbm_to_vmem [thread:$0]  %s3069_s5, 128, %s59_s22, [#allocation7]  }
  0x1c   :  { %s2574_s30 = smov [#allocation9]   ;;  %s2575_s21 = smov [#allocation12]  }
  0x1d   :  { %s83_s0 = sshll.u32 %s2574_s30, 4  ;;  %s107_s1 = sshll.u32 %s2575_s21, 4  ;;  %s84_s0 = int_to_ptr.vmem [resolvable:$true] %s83_s0  ;;  %s108_s1 = int_to_ptr.vmem [resolvable:$true] %s107_s1 }
  0x1e   :  { %s2295_s2 = scalar_lea.hbm %s3073_s9, 256 }
  0x1f   :  { %p2296_p8 = scmp.ne.s32.totalorder %s3073_s9, %s2295_s2  ;;  %p2299_p9 = scmp.lt.u32.totalorder %s2295_s2, %s3073_s9 }
  0x21   :  { %p2301_p10 = pnand %p2299_p9, %p2296_p8 }
  0x23   :  { %2304 = shalt.err (!%p2301_p10)
}
  0x24   :  { %s2305_s5 = scalar_lea.vmem %s84_s0, 256  ;;  %p2310_p12 = scmp.lt.s32.totalorder %s84_s0, %s84_s0 }
  0x25   :  { %p2306_p11 = scmp.ne.s32.totalorder %s84_s0, %s2305_s5  ;;  %p2311_p13 = scmp.lt.s32.totalorder %s2305_s5, %s2305_s5 }
  0x27   :  { %p2312_p0 = por %p2311_p13, %p2310_p12 }
  0x29   :  { %p2313_p1 = pnand %p2312_p0, %p2306_p11 }
  0x2b   :  { %2316 = shalt.err (!%p2313_p1)
}
  0x2c   :  { %s2576_s22 = smov 128   ;;  %s2577_s28 = smov 8  }
  0x2d   :  { %89 = dma.hbm_to_vmem [thread:$0]  %s3073_s9, 256, %s84_s0, [#allocation10], %s2576_s22, %s2576_s22, %s2577_s28  }
  0x2e   :  { %s2317_s23 = scalar_lea.hbm %s3075_s11, 256 }
  0x2f   :  { %p2318_p2 = scmp.ne.s32.totalorder %s3075_s11, %s2317_s23  ;;  %p2321_p3 = scmp.lt.u32.totalorder %s2317_s23, %s3075_s11 }
  0x31   :  { %p2323_p4 = pnand %p2321_p3, %p2318_p2 }
  0x33   :  { %2326 = shalt.err (!%p2323_p4)
}
  0x34   :  { %s2327_s26 = scalar_lea.vmem %s108_s1, 256  ;;  %p2332_p6 = scmp.lt.s32.totalorder %s108_s1, %s108_s1 }
  0x35   :  { %p2328_p5 = scmp.ne.s32.totalorder %s108_s1, %s2327_s26  ;;  %p2333_p7 = scmp.lt.s32.totalorder %s2327_s26, %s2327_s26 }
  0x37   :  { %p2334_p8 = por %p2333_p7, %p2332_p6 }
  0x39   :  { %p2335_p9 = pnand %p2334_p8, %p2328_p5 }
  0x3b   :  { %2338 = shalt.err (!%p2335_p9)
}
  0x3c   :  { %113 = dma.hbm_to_vmem [thread:$0]  %s3075_s11, 256, %s108_s1, [#allocation13], %s2576_s22, %s2576_s22, %s2577_s28  }
  0x3d   :  { %s2578_s27 = smov [#allocation15]   ;;  %s2579_s4 = smov [#allocation18]  }
  0x3e   :  { %s133_s5 = sshll.u32 %s2578_s27, 4  ;;  %s157_s29 = sshll.u32 %s2579_s4, 4  ;;  %s134_s5 = int_to_ptr.vmem [resolvable:$true] %s133_s5  ;;  %s158_s29 = int_to_ptr.vmem [resolvable:$true] %s157_s29 }
  0x3f   :  { %s2339_s23 = scalar_lea.hbm %s3078_s14, 1024 }
  0x40   :  { %p2340_p10 = scmp.ne.s32.totalorder %s3078_s14, %s2339_s23  ;;  %p2343_p11 = scmp.lt.u32.totalorder %s2339_s23, %s3078_s14 }
  0x42   :  { %p2345_p12 = pnand %p2343_p11, %p2340_p10 }
  0x44   :  { %2348 = shalt.err (!%p2345_p12)
}
  0x45   :  { %s2349_s11 = scalar_lea.vmem %s134_s5, 1024  ;;  %p2354_p0 = scmp.lt.s32.totalorder %s134_s5, %s134_s5 }
  0x46   :  { %p2350_p13 = scmp.ne.s32.totalorder %s134_s5, %s2349_s11  ;;  %p2355_p1 = scmp.lt.s32.totalorder %s2349_s11, %s2349_s11 }
  0x48   :  { %p2356_p2 = por %p2355_p1, %p2354_p0 }
  0x4a   :  { %p2357_p3 = pnand %p2356_p2, %p2350_p13 }
  0x4c   :  { %2360 = shalt.err (!%p2357_p3)
}
  0x4d   :  { %139 = dma.hbm_to_vmem [thread:$0]  %s3078_s14, 1024, %s134_s5, [#allocation16], %s2576_s22, %s2576_s22, %s2577_s28  }
  0x4e   :  { %s2361_s27 = scalar_lea.hbm %s3080_s16, 512 }
  0x4f   :  { %p2362_p4 = scmp.ne.s32.totalorder %s3080_s16, %s2361_s27  ;;  %p2365_p5 = scmp.lt.u32.totalorder %s2361_s27, %s3080_s16 }
  0x51   :  { %p2367_p6 = pnand %p2365_p5, %p2362_p4 }
  0x53   :  { %2370 = shalt.err (!%p2367_p6)
}
  0x54   :  { %s2371_s24 = scalar_lea.vmem %s158_s29, 512  ;;  %p2376_p8 = scmp.lt.s32.totalorder %s158_s29, %s158_s29 }
  0x55   :  { %p2372_p7 = scmp.ne.s32.totalorder %s158_s29, %s2371_s24  ;;  %p2377_p9 = scmp.lt.s32.totalorder %s2371_s24, %s2371_s24 }
  0x57   :  { %p2378_p10 = por %p2377_p9, %p2376_p8 }
  0x59   :  { %p2379_p11 = pnand %p2378_p10, %p2372_p7 }
  0x5b   :  { %2382 = shalt.err (!%p2379_p11)
}
  0x5c   :  { %163 = dma.hbm_to_vmem [thread:$0]  %s3080_s16, 512, %s158_s29, [#allocation19], %s2576_s22, %s2576_s22, %s2577_s28  }
  0x5d   :  { %s2580_s2 = smov [#allocation21]   ;;  %s2581_s3 = smov [#allocation4]  }
  0x5e   :  { %s182_s25 = sshll.u32 %s2580_s2, 4  ;;  %s45_s11 = sshll.u32 %s2581_s3, 4  ;;  %s183_s25 = int_to_ptr.vmem [resolvable:$true] %s182_s25  ;;  %s46_s11 = int_to_ptr.vmem [resolvable:$true] %s45_s11 }
  0x5f   :  { %s2383_s9 = scalar_lea.hbm %s3082_s18, 128 }
  0x60   :  { %p2384_p12 = scmp.ne.s32.totalorder %s3082_s18, %s2383_s9  ;;  %p2387_p13 = scmp.lt.u32.totalorder %s2383_s9, %s3082_s18 }
  0x62   :  { %p2389_p0 = pnand %p2387_p13, %p2384_p12 }
  0x64   :  { %2392 = shalt.err (!%p2389_p0)
}
  0x65   :  { %s2393_s16 = scalar_lea.vmem %s183_s25, 128  ;;  %p2398_p2 = scmp.lt.s32.totalorder %s183_s25, %s183_s25 }
  0x66   :  { %p2394_p1 = scmp.ne.s32.totalorder %s183_s25, %s2393_s16  ;;  %p2399_p3 = scmp.lt.s32.totalorder %s2393_s16, %s2393_s16 }
  0x68   :  { %p2400_p4 = por %p2399_p3, %p2398_p2 }
  0x6a   :  { %p2401_p5 = pnand %p2400_p4, %p2394_p1 }
  0x6c   :  { %2404 = shalt.err (!%p2401_p5)
}
  0x6d   :  { %185 = dma.hbm_to_vmem [thread:$0]  %s3082_s18, 128, %s183_s25, [#allocation22]  }
  0x6e   :  { %s3092_s14 = sld [smem:[#allocation35_spill]] }
  0x74   :  { %s2405_s5 = scalar_lea.hbm %s3092_s14, 256 }
  0x75   :  { %p2406_p6 = scmp.ne.s32.totalorder %s3092_s14, %s2405_s5  ;;  %p2409_p7 = scmp.lt.u32.totalorder %s2405_s5, %s3092_s14 }
  0x77   :  { %p2411_p8 = pnand %p2409_p7, %p2406_p6 }
  0x79   :  { %2414 = shalt.err (!%p2411_p8)
}
  0x7a   :  { %s2415_s9 = scalar_lea.vmem %s46_s11, 256  ;;  %p2420_p10 = scmp.lt.s32.totalorder %s46_s11, %s46_s11 }
  0x7b   :  { %p2416_p9 = scmp.ne.s32.totalorder %s46_s11, %s2415_s9  ;;  %p2421_p11 = scmp.lt.s32.totalorder %s2415_s9, %s2415_s9 }
  0x7d   :  { %p2422_p12 = por %p2421_p11, %p2420_p10 }
  0x7f   :  { %p2423_p13 = pnand %p2422_p12, %p2416_p9 }
  0x81   :  { %2426 = shalt.err (!%p2423_p13)
}
  0x82   :  { %51 = dma.hbm_to_vmem [thread:$0]  %s3092_s14, 256, %s46_s11, [#allocation5], %s2576_s22, %s2576_s22, %s2577_s28  }
  0x83   :  { %s2582_s0 = smov [#allocation8]   ;;  %s2583_s4 = smov [#allocation11]  }
  0x84   :  { %s69_s27 = sshll.u32 %s2582_s0, 4  ;;  %s95_s30 = sshll.u32 %s2583_s4, 4  ;;  %s70_s27 = int_to_ptr.vmem [resolvable:$true] %s69_s27  ;;  %s96_s30 = int_to_ptr.vmem [resolvable:$true] %s95_s30 }
  0x85   :  { %s2427_s21 = scalar_lea.hbm %s3071_s7, 256 }
  0x86   :  { %p2428_p0 = scmp.ne.s32.totalorder %s3071_s7, %s2427_s21  ;;  %p2431_p1 = scmp.lt.u32.totalorder %s2427_s21, %s3071_s7 }
  0x88   :  { %p2433_p2 = pnand %p2431_p1, %p2428_p0 }
  0x8a   :  { %2436 = shalt.err (!%p2433_p2)
}
  0x8b   :  { %s2437_s11 = scalar_lea.vmem %s70_s27, 256  ;;  %p2442_p4 = scmp.lt.s32.totalorder %s70_s27, %s70_s27 }
  0x8c   :  { %p2438_p3 = scmp.ne.s32.totalorder %s70_s27, %s2437_s11  ;;  %p2443_p5 = scmp.lt.s32.totalorder %s2437_s11, %s2437_s11 }
  0x8e   :  { %p2444_p6 = por %p2443_p5, %p2442_p4 }
  0x90   :  { %p2445_p7 = pnand %p2444_p6, %p2438_p3 }
  0x92   :  { %2448 = shalt.err (!%p2445_p7)
}
  0x93   :  { %75 = dma.hbm_to_vmem [thread:$0]  %s3071_s7, 256, %s70_s27, [#allocation7], %s2576_s22, %s2576_s22, %s2577_s28  }
  0x94   :  { %s2449_s9 = scalar_lea.hbm %s3074_s10, 256 }
  0x95   :  { %p2450_p8 = scmp.ne.s32.totalorder %s3074_s10, %s2449_s9  ;;  %p2453_p9 = scmp.lt.u32.totalorder %s2449_s9, %s3074_s10 }
  0x97   :  { %p2455_p10 = pnand %p2453_p9, %p2450_p8 }
  0x99   :  { %2458 = shalt.err (!%p2455_p10)
}
  0x9a   :  { %s2459_s16 = scalar_lea.vmem %s96_s30, 256  ;;  %p2464_p12 = scmp.lt.s32.totalorder %s96_s30, %s96_s30 }
  0x9b   :  { %p2460_p11 = scmp.ne.s32.totalorder %s96_s30, %s2459_s16  ;;  %p2465_p13 = scmp.lt.s32.totalorder %s2459_s16, %s2459_s16 }
  0x9d   :  { %p2466_p0 = por %p2465_p13, %p2464_p12 }
  0x9f   :  { %p2467_p1 = pnand %p2466_p0, %p2460_p11 }
  0xa1   :  { %2470 = shalt.err (!%p2467_p1)
}
  0xa2   :  { %101 = dma.hbm_to_vmem [thread:$0]  %s3074_s10, 256, %s96_s30, [#allocation10], %s2576_s22, %s2576_s22, %s2577_s28  }
  0xa3   :  { %s2584_s29 = smov [#allocation14]   ;;  %s2585_s23 = smov [#allocation17]  }
  0xa4   :  { %s121_s21 = sshll.u32 %s2584_s29, 4  ;;  %s145_s24 = sshll.u32 %s2585_s23, 4  ;;  %s122_s21 = int_to_ptr.vmem [resolvable:$true] %s121_s21  ;;  %s146_s24 = int_to_ptr.vmem [resolvable:$true] %s145_s24 }
  0xa5   :  { %s2471_s11 = scalar_lea.hbm %s3077_s13, 512 }
  0xa6   :  { %p2472_p2 = scmp.ne.s32.totalorder %s3077_s13, %s2471_s11  ;;  %p2475_p3 = scmp.lt.u32.totalorder %s2471_s11, %s3077_s13 }
  0xa8   :  { %p2477_p4 = pnand %p2475_p3, %p2472_p2 }
  0xaa   :  { %2480 = shalt.err (!%p2477_p4)
}
  0xab   :  { %s2481_s10 = scalar_lea.vmem %s122_s21, 512  ;;  %p2486_p6 = scmp.lt.s32.totalorder %s122_s21, %s122_s21 }
  0xac   :  { %p2482_p5 = scmp.ne.s32.totalorder %s122_s21, %s2481_s10  ;;  %p2487_p7 = scmp.lt.s32.totalorder %s2481_s10, %s2481_s10 }
  0xae   :  { %p2488_p8 = por %p2487_p7, %p2486_p6 }
  0xb0   :  { %p2489_p9 = pnand %p2488_p8, %p2482_p5 }
  0xb2   :  { %2492 = shalt.err (!%p2489_p9)
}
  0xb3   :  { %127 = dma.hbm_to_vmem [thread:$0]  %s3077_s13, 512, %s122_s21, [#allocation13], %s2576_s22, %s2576_s22, %s2577_s28  }
  0xb4   :  { %s2493_s0 = scalar_lea.hbm %s3079_s15, 512 }
  0xb5   :  { %p2494_p10 = scmp.ne.s32.totalorder %s3079_s15, %s2493_s0  ;;  %p2497_p11 = scmp.lt.u32.totalorder %s2493_s0, %s3079_s15 }
  0xb7   :  { %p2499_p12 = pnand %p2497_p11, %p2494_p10 }
  0xb9   :  { %2502 = shalt.err (!%p2499_p12)
}
  0xba   :  { %s2503_s29 = scalar_lea.vmem %s146_s24, 512  ;;  %p2508_p0 = scmp.lt.s32.totalorder %s146_s24, %s146_s24 }
  0xbb   :  { %p2504_p13 = scmp.ne.s32.totalorder %s146_s24, %s2503_s29  ;;  %p2509_p1 = scmp.lt.s32.totalorder %s2503_s29, %s2503_s29 }
  0xbd   :  { %p2510_p2 = por %p2509_p1, %p2508_p0 }
  0xbf   :  { %p2511_p3 = pnand %p2510_p2, %p2504_p13 }
  0xc1   :  { %2514 = shalt.err (!%p2511_p3)
}
  0xc2   :  { %151 = dma.hbm_to_vmem [thread:$0]  %s3079_s15, 512, %s146_s24, [#allocation16], %s2576_s22, %s2576_s22, %s2577_s28  }
  0xc3   :  { %s2586_s23 = smov [#allocation20]   ;;  %s2587_s2 = smov [#allocation23]  }
  0xc4   :  { %s169_s5 = sshll.u32 %s2586_s23, 4  ;;  %s192_s11 = sshll.u32 %s2587_s2, 4  ;;  %s170_s5 = int_to_ptr.vmem [resolvable:$true] %s169_s5  ;;  %s193_s11 = int_to_ptr.vmem [resolvable:$true] %s192_s11 }
  0xc5   :  { %s2515_s1 = scalar_lea.hbm %s3081_s17, 512 }
  0xc6   :  { %p2516_p4 = scmp.ne.s32.totalorder %s3081_s17, %s2515_s1  ;;  %p2519_p5 = scmp.lt.u32.totalorder %s2515_s1, %s3081_s17 }
  0xc8   :  { %p2521_p6 = pnand %p2519_p5, %p2516_p4 }
  0xca   :  { %2524 = shalt.err (!%p2521_p6)
}
  0xcb   :  { %s2525_s15 = scalar_lea.vmem %s170_s5, 512  ;;  %p2530_p8 = scmp.lt.s32.totalorder %s170_s5, %s170_s5 }
  0xcc   :  { %p2526_p7 = scmp.ne.s32.totalorder %s170_s5, %s2525_s15  ;;  %p2531_p9 = scmp.lt.s32.totalorder %s2525_s15, %s2525_s15 }
  0xce   :  { %p2532_p10 = por %p2531_p9, %p2530_p8 }
  0xd0   :  { %p2533_p11 = pnand %p2532_p10, %p2526_p7 }
  0xd2   :  { %2536 = shalt.err (!%p2533_p11)
}
  0xd3   :  { %175 = dma.hbm_to_vmem [thread:$0]  %s3081_s17, 512, %s170_s5, [#allocation19], %s2576_s22, %s2576_s22, %s2577_s28  }
  0xd4   :  { %s2537_s4 = scalar_lea.hbm %s3083_s19, 128 }
  0xd5   :  { %p2538_p12 = scmp.ne.s32.totalorder %s3083_s19, %s2537_s4  ;;  %p2541_p13 = scmp.lt.u32.totalorder %s2537_s4, %s3083_s19 }
  0xd7   :  { %p2543_p0 = pnand %p2541_p13, %p2538_p12 }
  0xd9   :  { %2546 = shalt.err (!%p2543_p0)
}
  0xda   :  { %s2547_s13 = scalar_lea.vmem %s193_s11, 128  ;;  %p2552_p2 = scmp.lt.s32.totalorder %s193_s11, %s193_s11 }
  0xdb   :  { %p2548_p1 = scmp.ne.s32.totalorder %s193_s11, %s2547_s13  ;;  %p2553_p3 = scmp.lt.s32.totalorder %s2547_s13, %s2547_s13 }
  0xdd   :  { %p2554_p4 = por %p2553_p3, %p2552_p2 }
  0xdf   :  { %p2555_p5 = pnand %p2554_p4, %p2548_p1 }
  0xe1   :  { %2558 = shalt.err (!%p2555_p5)
}
  0xe2   :  { %195 = dma.hbm_to_vmem [thread:$0]  %s3083_s19, 128, %s193_s11, [#allocation22]  }
  0xe3   :  { %2559 = dma.done.wait [#allocation5], 256  }
  0xe4   :  { %2560 = vsyncadd [#allocation5], 4294967040 }
  0xe5   :  { %2561 = dma.done.wait [#allocation7], 384  }
  0xe6   :  { %2562 = vsyncadd [#allocation7], 4294966912 }
  0xe7   :  { %2563 = dma.done.wait [#allocation10], 512  }
  0xe8   :  { %2564 = vsyncadd [#allocation10], 4294966784 }
  0xe9   :  { %2565 = dma.done.wait [#allocation13], 768  }
  0xea   :  { %2566 = vsyncadd [#allocation13], 4294966528 }
  0xeb   :  { %2567 = dma.done.wait [#allocation16], 1536  }
  0xec   :  { %2568 = vsyncadd [#allocation16], 4294965760 }
  0xed   :  { %2569 = dma.done.wait [#allocation19], 1024  }
  0xee   :  { %2570 = vsyncadd [#allocation19], 4294966272 }
  0xef   :  { %2571 = dma.done.wait [#allocation22], 256  }
  0xf0   :  { %2572 = vsyncadd [#allocation22], 4294967040  ;;  %v2588_v0 = vmov 0.0   ;;  %vm2589_vm0 = vmmov 0   ;;  %v2590_v1 = vmov 0   ;;  %s3093_s21 = sld [smem:[#allocation31_spill]] }
  0xf1   :  { %2024 = vmatprep.subr.mxu0 %v2588_v0  ;;  %2026 = vmatprep.mubr.msk.f32.mxu0 %vm2589_vm0, %v2588_v0  ;;  %s2591_s23 = smov 124   ;;  %s3094_s11 = sld [smem:[#allocation34_spill]]  ;;  %vm253_vm1 = vcmask 64512   ;;  %vm235_vm2 = vcmask 31744   ;;  %vm422_vm3 = vcmask 326688   ;;  %v581_v20 = vld [vmem:[#allocation6] sm:$0xff] }
  0xf2   :  { %2029 = vmatprep.subr.mxu1 %v2588_v0  ;;  %2031 = vmatprep.mubr.msk.f32.mxu1 %vm2589_vm0, %v2588_v0  ;;  %s2592_s14 = smov 125   ;;  %s3095_s26 = sld [smem:[#allocation33_spill]]  ;;  %240 = vst.msk [vmem:[#allocation3] sm:$0xff] %vm235_vm2, %v2588_v0  ;;  %236 = vst.msk [vmem:[#allocation2] sm:$0xff] %vm235_vm2, %v2588_v0  ;;  %v427_v21 = vld [vmem:[#allocation4 + $0x8] sm:$0xff]  ;;  %v425_v22 = vld [vmem:[#allocation4] sm:$0xff] }
  0xf3   :  { %2221 = vset.pattern.permute.xlu1 %v2590_v1  ;;  %2222 = vset.pattern.permute.xlu0 %v2590_v1  ;;  %237 = vst.msk [vmem:[#allocation2 + $0x8] sm:$0xff] %vm235_vm2, %v2588_v0  ;;  %241 = vst.msk [vmem:[#allocation3 + $0x8] sm:$0xff] %vm235_vm2, %v2588_v0  ;;  %s3096_s24 = sld [smem:[#allocation32_spill]]  ;;  %s2593_s18 = smov 4   ;;  %v1921_v37 = vld [vmem:[%s3070_s6 + $0x10] sm:$0xff]  ;;  %v778_v40 = vld [vmem:[#allocation8 + $0x8] sm:$0xff] }
  0xf4   :  { %242 = vst.msk [vmem:[#allocation3 + $0x10] sm:$0xff] %vm235_vm2, %v2588_v0  ;;  %243 = vst.msk [vmem:[#allocation3 + $0x18] sm:$0xff] %vm235_vm2, %v2588_v0  ;;  %s2594_s4 = smov 126   ;;  %v777_v41 = vld [vmem:[#allocation8] sm:$0xff]  ;;  %v603_v44 = vld [vmem:[%s3070_s6] sm:$0xff]  ;;  %vm820_vm4 = vcmask 130048  }
  0xf5   :  { %v1922_v43 = vld [vmem:[%s3070_s6 + $0x18] sm:$0xff]  ;;  %v604_v46 = vld [vmem:[%s3070_s6 + $0x8] sm:$0xff]  ;;  %v1927_v60 = vld [vmem:[%s3072_s8 + $0x10] sm:$0xff]  ;;  %vm1419_vm5 = vcmask 261120   ;;  %vm1817_vm6 = vcmask 7168   ;;  %vm1902_vm7 = vcmask 12288  }
  0xf6   :  { %v245_v2 = vld [vmem:[%s3093_s21] sm:$0xff]  ;;  %v1005_v59 = vld [vmem:[#allocation11] sm:$0xff]  ;;  %v989_v1 = vld [vmem:[#allocation9] sm:$0xff] }
  0xf7   :  { %250 = vrot.lane.b32.xlu0 %v245_v2, %s2591_s23  ;;  %v403_v3 = vld [vmem:[%s3094_s11] sm:$0xff] }
  0xf8   :  { %406 = vperm.xlu1 %2221, %v403_v3   ;;  %v1915_v4 = vld [vmem:[%s3095_s26 + $0x8] sm:$0xff]  ;;  %v246_v6 = vld [vmem:[%s3095_s26] sm:$0xff]  ;;  %v990_v3 = vld [vmem:[#allocation9 + $0x8] sm:$0xff] }
  0xf9   :  { %v2926_v15 = vld [vmem:[%s3096_s24] ss:$0 sm:$0xff] }
  0xfb   :  { %327 = vrot.lane.b32.xlu0 %v245_v2, %s2592_s14 }
 0x169   :  { %v251_v5 = vpop.permute.xlu0 %250 }
 0x16a   :  { %2025 = vmatpush3.msra.mxu0 %v251_v5 }
 0x16b   :  { %2027 = vmatmul.mubr.msk.f32.vlgmr.msra.gmra.mrb[0].mxu0 %vm253_vm1, %v1915_v4  ;;  %2034 = vmatprep.subr.mxu0 %v2588_v0  ;;  %v1009_v4 = vld [vmem:[#allocation12 + $0x8] sm:$0xff] }
 0x16c   :  { %2036 = vmatprep.mubr.msk.f32.mxu0 %vm2589_vm0, %v2588_v0 }
 0x16d   :  { %v328_v7 = vpop.permute.xlu0 %327 }
 0x16e   :  { %2030 = vmatpush3.msra.mxu1 %v328_v7 }
 0x16f   :  { %2032 = vmatmul.mubr.msk.f32.vlgmr.msra.gmra.mrb[0].mxu1 %vm253_vm1, %v246_v6  ;;  %2039 = vmatprep.subr.mxu1 %v2588_v0 }
 0x170   :  { %2041 = vmatprep.mubr.msk.f32.mxu1 %vm2589_vm0, %v2588_v0 }
 0x177   :  { %v407_v11 = vpop.permute.xlu1 %406 }
 0x23e   :  { %v323_v8 = vpop.f32.mrb[0].mxu0 }
 0x23f   :  { %v2028_v9 = vpop.f32.mrb[1].mxu0 }
 0x242   :  { %v399_v10 = vpop.f32.mrb[0].mxu1 }
 0x243   :  { %v400_v12 = vadd.f32 %v399_v10, %v323_v8  ;;  %v2033_v13 = vpop.f32.mrb[1].mxu1 }
 0x244   :  { %v1006_v13 = vld [vmem:[#allocation11 + $0x8] sm:$0xff] }
 0x245   :  { %v409_v14 = vadd.f32 %v407_v11, %v400_v12 }
 0x247   :  { %v410_v16 = vmax.f32 %v409_v14, 0.0 }
 0x249   :  { %v417_v17 = vmul.f32 %v2926_v15, %v410_v16  ;;  %v1928_v16 = vld [vmem:[%s3072_s8 + $0x18] sm:$0xff] }
 0x24b   :  { %419 = vrot.lane.b32.xlu1 %v417_v17, %s2593_s18  ;;  %v807_v17 = vld [vmem:[%s3072_s8] sm:$0xff] }
 0x2bd   :  { %v420_v18 = vpop.permute.xlu1 %419 }
 0x2be   :  { %423 = vst.msk [vmem:[#allocation3] sm:$0xff] %vm422_vm3, %v420_v18  ;;  %v808_v18 = vld [vmem:[%s3072_s8 + $0x8] sm:$0xff] }
 0x2c5   :  { %v424_v19 = vld [vmem:[#allocation3] sm:$0xff] }
 0x2c6   :  { %505 = vrot.lane.b32.xlu1 %v424_v19, %s2592_s14  ;;  %429 = vrot.lane.b32.xlu0 %v424_v19, %s2591_s23 }
 0x2ca   :  { %584 = vperm.xlu0 %2222, %v581_v20   ;;  %591 = vrot.lane.b32.xlu1 %v245_v2, %s2591_s23  ;;  %v1008_v2 = vld [vmem:[#allocation12] sm:$0xff] }
 0x338   :  { %v506_v23 = vpop.permute.xlu1 %505  ;;  %v430_v24 = vpop.permute.xlu0 %429 }
 0x339   :  { %2035 = vmatpush3.msra.mxu0 %v430_v24  ;;  %2040 = vmatpush3.msra.mxu1 %v506_v23 }
 0x33a   :  { %2037 = vmatmul.mubr.msk.f32.vlgmr.msra.gmra.mrb[2].mxu0 %vm253_vm1, %v427_v21  ;;  %2042 = vmatmul.mubr.msk.f32.vlgmr.msra.gmra.mrb[2].mxu1 %vm253_vm1, %v425_v22 }
 0x33b   :  { %2046 = vmatprep.mubr.msk.f32.mxu0 %vm253_vm1, %v1921_v37  ;;  %2058 = vmatprep.mubr.msk.f32.mxu1 %vm820_vm4, %v1927_v60  ;;  %v1126_v60 = vld [vmem:[%s3076_s12 + $0x18] sm:$0xff] }
 0x33c   :  { %v592_v32 = vpop.permute.xlu1 %591 }
 0x349   :  { %v585_v25 = vpop.permute.xlu0 %584 }
 0x40d   :  { %v501_v26 = vpop.f32.mrb[2].mxu0  ;;  %v577_v27 = vpop.f32.mrb[2].mxu1 }
 0x40e   :  { %v578_v28 = vadd.f32 %v577_v27, %v501_v26  ;;  %v2038_v29 = vpop.f32.mrb[3].mxu0  ;;  %v2043_v30 = vpop.f32.mrb[3].mxu1 }
 0x410   :  { %v587_v31 = vadd.f32 %v585_v25, %v578_v28 }
 0x412   :  { %v588_v33 = vmax.f32 %v587_v31, 0.0 }
 0x414   :  { %v594_v34 = vadd.f32 %v592_v32, %v588_v33 }
 0x416   :  { %v595_v35 = vmax.f32 %v594_v34, 0.0 }
 0x418   :  { %v596_v36 = vmul.f32 %v2926_v15, %v595_v35 }
 0x41a   :  { %598 = vrot.lane.b32.xlu1 %v596_v36, %s2593_s18 }
 0x48c   :  { %v599_v38 = vpop.permute.xlu1 %598 }
 0x48d   :  { %601 = vst.msk [vmem:[#allocation2] sm:$0xff] %vm422_vm3, %v599_v38 }
 0x494   :  { %v602_v39 = vld [vmem:[#allocation2] sm:$0xff] }
 0x495   :  { %693 = vrot.lane.b32.xlu1 %v602_v39, %s2594_s4  ;;  %609 = vrot.lane.b32.xlu0 %v602_v39, %s2591_s23 }
 0x499   :  { %786 = vperm.xlu1 %2221, %v778_v40   ;;  %781 = vperm.xlu0 %2222, %v777_v41   ;;  %v1336_v40 = vld [vmem:[#allocation14 + $0x10] sm:$0xff] }
 0x507   :  { %v610_v42 = vpop.permute.xlu0 %609  ;;  %v694_v45 = vpop.permute.xlu1 %693 }
 0x508   :  { %2044 = vmatprep.subr.mxu0 %v610_v42 }
 0x509   :  { %2045 = vmatpush3.msra.mxu0 %v610_v42 }
 0x50a   :  { %2047 = vmatmul.mubr.msk.f32.vlgmr.msra.gmra.mrb[4].mxu0 %vm253_vm1, %v1922_v43  ;;  %2049 = vmatprep.subr.mxu0 %v694_v45  ;;  %v1935_v43 = vld [vmem:[%s3076_s12 + $0x20] sm:$0xff] }
 0x50b   :  { %2050 = vmatpush3.msra.mxu0 %v694_v45  ;;  %2051 = vmatprep.mubr.msk.f32.mxu0 %vm253_vm1, %v603_v44 }
 0x512   :  { %2052 = vmatmul.mubr.msk.f32.vlgmr.msra.gmra.mrb[4].mxu0 %vm253_vm1, %v604_v46 }
 0x513   :  { %2070 = vmatprep.mubr.msk.f32.mxu0 %vm253_vm1, %v1005_v59  ;;  %v1125_v59 = vld [vmem:[%s3076_s12 + $0x10] sm:$0xff] }
 0x518   :  { %v787_v47 = vpop.permute.xlu1 %786  ;;  %v782_v49 = vpop.permute.xlu0 %781 }
 0x5e5   :  { %v2053_v48 = vpop.f32.mrb[4].mxu0 }
 0x5e6   :  { %v790_v50 = vadd.f32 %v2053_v48, %v787_v47  ;;  %v768_v51 = vpop.f32.mrb[5].mxu0  ;;  %v1335_v48 = vld [vmem:[#allocation14 + $0x8] sm:$0xff] }
 0x5e7   :  { %v789_v52 = vadd.f32 %v782_v49, %v768_v51  ;;  %v1337_v49 = vld [vmem:[#allocation14 + $0x18] sm:$0xff] }
 0x5e8   :  { %v792_v53 = vmax.f32 %v790_v50, 0.0 }
 0x5e9   :  { %v791_v54 = vmax.f32 %v789_v52, 0.0 }
 0x5ea   :  { %v794_v55 = vmul.f32 %v2926_v15, %v792_v53 }
 0x5eb   :  { %v793_v56 = vmul.f32 %v2926_v15, %v791_v54  ;;  %v1936_v54 = vld [vmem:[%s3076_s12 + $0x28] sm:$0xff] }
 0x5ec   :  { %799 = vrot.lane.b32.xlu1 %v794_v55, %s2593_s18  ;;  %v1937_v55 = vld [vmem:[%s3076_s12 + $0x30] sm:$0xff] }
 0x5ed   :  { %797 = vrot.lane.b32.xlu0 %v793_v56, %s2593_s18  ;;  %v1938_v56 = vld [vmem:[%s3076_s12 + $0x38] sm:$0xff] }
 0x65e   :  { %v800_v57 = vpop.permute.xlu1 %799 }
 0x65f   :  { %804 = vst.msk [vmem:[#allocation3 + $0x8] sm:$0xff] %vm422_vm3, %v800_v57  ;;  %v798_v58 = vpop.permute.xlu0 %797  ;;  %v1123_v57 = vld [vmem:[%s3076_s12] sm:$0xff] }
 0x660   :  { %803 = vst.msk [vmem:[#allocation3] sm:$0xff] %vm422_vm3, %v798_v58  ;;  %v1124_v58 = vld [vmem:[%s3076_s12 + $0x8] sm:$0xff]  ;;  %s2596_s12 = smov 94  }
 0x666   :  { %v806_v61 = vld [vmem:[#allocation3 + $0x8] sm:$0xff] }
 0x667   :  { %v805_v62 = vld [vmem:[#allocation3] sm:$0xff] }
 0x668   :  { %v2228_v63 = vpack.i.bf16 %v806_v61, %v805_v62 }
 0x66a   :  { %2229 = vrot.lane.b32.xlu1 %v2228_v63, %s2594_s4  ;;  %2224 = vrot.lane.b32.xlu0 %v2228_v63, %s2591_s23 }
 0x66e   :  { %993 = vperm.xlu1 %2221, %v989_v1   ;;  %1021 = vrot.lane.b32.xlu0 %v602_v39, %s2591_s23  ;;  %v1334_v39 = vld [vmem:[#allocation14] sm:$0xff] }
 0x672   :  { %1012 = vperm.xlu1 %2221, %v1008_v2   ;;  %998 = vperm.xlu0 %2222, %v990_v3  }
 0x676   :  { %1017 = vperm.xlu0 %2222, %v1009_v4  }
 0x6dc   :  { %v2230_v5 = vpop.permute.xlu1 %2229  ;;  %v2225_v6 = vpop.permute.xlu0 %2224 }
 0x6dd   :  { %v2232_v7 = vunpack.i.h.bf16 %v2230_v5  ;;  %v2231_v8 = vunpack.i.l.bf16 %v2230_v5  ;;  %v2227_v9 = vunpack.i.h.bf16 %v2225_v6  ;;  %v2226_v10 = vunpack.i.l.bf16 %v2225_v6 }
 0x6df   :  { %v2142_v11 = vpack.c.bf16 %v2227_v9, %v2226_v10  ;;  %v2146_v14 = vpack.c.bf16 %v2232_v7, %v2231_v8 }
 0x6e0   :  { %v1022_v12 = vpop.permute.xlu0 %1021 }
 0x6e1   :  { %2143 = vmatprep.subr.bf16.mxu1 %v2142_v11  ;;  %2068 = vmatprep.subr.mxu0 %v1022_v12 }
 0x6e2   :  { %2145 = vmatpush3.bf16.msra.mxu1 %v2142_v11  ;;  %2069 = vmatpush3.msra.mxu0 %v1022_v12 }
 0x6e3   :  { %2147 = vmatprep.subr.bf16.mxu1 %v2146_v14  ;;  %2071 = vmatmul.mubr.msk.f32.vlgmr.msra.gmra.mrb[6].mxu0 %vm253_vm1, %v1006_v13 }
 0x6e5   :  { %2059 = vmatmul.mubr.msk.f32.vlgmr.msra.gmra.mrb[4].mxu1 %vm820_vm4, %v1928_v16 }
 0x6e6   :  { %2149 = vmatpush3.bf16.msra.mxu1 %v2146_v14  ;;  %2065 = vmatprep.mubr.msk.f32.mxu1 %vm820_vm4, %v807_v17 }
 0x6ed   :  { %2066 = vmatmul.mubr.msk.f32.vlgmr.msra.gmra.mrb[4].mxu1 %vm820_vm4, %v808_v18  ;;  %v994_v22 = vpop.permute.xlu1 %993 }
 0x6ee   :  { %2077 = vmatprep.mubr.msk.f32.mxu1 %vm820_vm4, %v1935_v43 }
 0x6f1   :  { %v999_v21 = vpop.permute.xlu0 %998  ;;  %v1013_v28 = vpop.permute.xlu1 %1012 }
 0x6f5   :  { %v1018_v26 = vpop.permute.xlu0 %1017 }
 0x7b6   :  { %v2072_v19 = vpop.f32.mrb[6].mxu0 }
 0x7b7   :  { %v1096_v20 = vpop.f32.mrb[7].mxu0  ;;  %v1102_v29 = vadd.f32 %v2072_v19, %v1018_v26 }
 0x7b8   :  { %v1097_v31 = vadd.f32 %v1096_v20, %v1013_v28 }
 0x7c0   :  { %v2067_v23 = vpop.f32.mrb[4].mxu1 }
 0x7c1   :  { %v1002_v24 = vadd.f32 %v2067_v23, %v999_v21  ;;  %v980_v25 = vpop.f32.mrb[5].mxu1 }
 0x7c2   :  { %v1001_v27 = vadd.f32 %v994_v22, %v980_v25  ;;  %v1399_v25 = vld [vmem:[#allocation15 + $0x20] sm:$0xff] }
 0x7c3   :  { %v1004_v30 = vmax.f32 %v1002_v24, 0.0  ;;  %2101 = vmatprep.mubr.msk.f32.mxu0 %vm1419_vm5, %v1399_v25 }
 0x7c4   :  { %v1003_v32 = vmax.f32 %v1001_v27, 0.0 }
 0x7c5   :  { %v1106_v33 = vadd.f32 %v1102_v29, %v1004_v30 }
 0x7c6   :  { %v1105_v34 = vadd.f32 %v1097_v31, %v1003_v32  ;;  %v1615_v32 = vld [vmem:[#allocation17 + $0x8] sm:$0xff] }
 0x7c7   :  { %v1108_v35 = vmax.f32 %v1106_v33, 0.0  ;;  %v1614_v33 = vld [vmem:[#allocation17] sm:$0xff] }
 0x7c8   :  { %v1107_v36 = vmax.f32 %v1105_v34, 0.0  ;;  %v1653_v34 = vld [vmem:[#allocation20 + $0x8] sm:$0xff] }
 0x7c9   :  { %v1110_v37 = vmul.f32 %v2926_v15, %v1108_v35  ;;  %v1652_v35 = vld [vmem:[#allocation20] sm:$0xff] }
 0x7ca   :  { %v1109_v38 = vmul.f32 %v2926_v15, %v1107_v36  ;;  %v1617_v36 = vld [vmem:[#allocation17 + $0x18] sm:$0xff] }
 0x7cb   :  { %1115 = vrot.lane.b32.xlu0 %v1110_v37, %s2593_s18  ;;  %v1616_v37 = vld [vmem:[#allocation17 + $0x10] sm:$0xff] }
 0x7cc   :  { %1113 = vrot.lane.b32.xlu1 %v1109_v38, %s2593_s18  ;;  %v1655_v38 = vld [vmem:[#allocation20 + $0x18] sm:$0xff] }
 0x7cf   :  { %1340 = vperm.xlu0 %2222, %v1334_v39   ;;  %v1654_v39 = vld [vmem:[#allocation20 + $0x10] sm:$0xff] }
 0x7d3   :  { %1350 = vperm.xlu0 %2222, %v1336_v40  }
 0x83d   :  { %v1116_v41 = vpop.permute.xlu0 %1115 }
 0x83e   :  { %1120 = vst.msk [vmem:[#allocation2 + $0x8] sm:$0xff] %vm422_vm3, %v1116_v41  ;;  %v1114_v42 = vpop.permute.xlu1 %1113 }
 0x83f   :  { %1119 = vst.msk [vmem:[#allocation2] sm:$0xff] %vm422_vm3, %v1114_v42 }
 0x845   :  { %v1122_v44 = vld [vmem:[#allocation2 + $0x8] sm:$0xff] }
 0x846   :  { %v1121_v45 = vld [vmem:[#allocation2] sm:$0xff] }
 0x847   :  { %v2994_v46 = vpack.i.bf16 %v1122_v44, %v1121_v45  ;;  %v2154_v47 = vpack.c.bf16 %v1122_v44, %v1121_v45 }
 0x849   :  { %2234 = vrot.lane.b32.xlu1 %v2994_v46, %s2591_s23 }
 0x84d   :  { %1345 = vperm.xlu1 %2221, %v1335_v48  }
 0x84e   :  { %v1341_v62 = vpop.permute.xlu0 %1340 }
 0x851   :  { %1355 = vperm.xlu1 %2221, %v1337_v49  }
 0x852   :  { %v1351_v8 = vpop.permute.xlu0 %1350 }
 0x8bb   :  { %v2235_v50 = vpop.permute.xlu1 %2234 }
 0x8bc   :  { %v2237_v51 = vunpack.i.h.bf16 %v2235_v50  ;;  %v2236_v52 = vunpack.i.l.bf16 %v2235_v50 }
 0x8be   :  { %v2150_v53 = vpack.c.bf16 %v2237_v51, %v2236_v52  ;;  %v1400_v52 = vld [vmem:[#allocation15 + $0x28] sm:$0xff] }
 0x8c0   :  { %2151 = vmatprep.subr.bf16.mxu1 %v2150_v53 }
 0x8c1   :  { %2153 = vmatpush3.bf16.msra.mxu1 %v2150_v53  ;;  %v1647_v53 = vld [vmem:[#allocation18 + $0x8] sm:$0xff] }
 0x8c2   :  { %2155 = vmatprep.subr.bf16.mxu1 %v2154_v47 }
 0x8c4   :  { %2078 = vmatmul.mubr.msk.f32.vlgmr.msra.gmra.mrb[6].mxu1 %vm820_vm4, %v1936_v54  ;;  %v1401_v54 = vld [vmem:[#allocation15 + $0x30] sm:$0xff] }
 0x8c5   :  { %2157 = vmatpush3.bf16.msra.mxu1 %v2154_v47  ;;  %2080 = vmatprep.mubr.msk.f32.mxu1 %vm820_vm4, %v1937_v55  ;;  %v1648_v55 = vld [vmem:[#allocation18 + $0x10] sm:$0xff] }
 0x8c8   :  { %2081 = vmatmul.mubr.msk.f32.gmra.mrb[8].mxu1 %vm820_vm4, %v1938_v56  ;;  %v1402_v56 = vld [vmem:[#allocation15 + $0x38] sm:$0xff] }
 0x8c9   :  { %2087 = vmatprep.mubr.msk.f32.mxu1 %vm820_vm4, %v1123_v57  ;;  %v1649_v57 = vld [vmem:[#allocation18 + $0x18] sm:$0xff] }
 0x8cc   :  { %2088 = vmatmul.mubr.msk.f32.vlgmr.msra.gmra.mrb[6].mxu1 %vm820_vm4, %v1124_v58  ;;  %v1346_v61 = vpop.permute.xlu1 %1345  ;;  %v1394_v58 = vld [vmem:[#allocation15] sm:$0xff] }
 0x8cd   :  { %2090 = vmatprep.mubr.msk.f32.mxu1 %vm820_vm4, %v1125_v59  ;;  %v1395_v59 = vld [vmem:[#allocation15 + $0x8] sm:$0xff] }
 0x8d0   :  { %2091 = vmatmul.mubr.msk.f32.gmra.mrb[8].mxu1 %vm820_vm4, %v1126_v60  ;;  %v1356_v5 = vpop.permute.xlu1 %1355  ;;  %v1396_v60 = vld [vmem:[#allocation15 + $0x10] sm:$0xff] }
 0x99f   :  { %v2089_v63 = vpop.f32.mrb[6].mxu1 }
 0x9a0   :  { %v1359_v1 = vadd.f32 %v2089_v63, %v1346_v61  ;;  %v1315_v2 = vpop.f32.mrb[7].mxu1  ;;  %v1397_v61 = vld [vmem:[#allocation15 + $0x18] sm:$0xff] }
 0x9a1   :  { %v1358_v3 = vadd.f32 %v1341_v62, %v1315_v2 }
 0x9a2   :  { %v1363_v4 = vmax.f32 %v1359_v1, 0.0 }
 0x9a3   :  { %v1362_v6 = vmax.f32 %v1358_v3, 0.0  ;;  %v2092_v7 = vpop.f32.mrb[8].mxu1 }
 0x9a4   :  { %v1367_v9 = vmul.f32 %v2926_v15, %v1363_v4  ;;  %v1361_v10 = vadd.f32 %v2092_v7, %v1356_v5  ;;  %v1325_v11 = vpop.f32.mrb[9].mxu1 }
 0x9a5   :  { %v1366_v12 = vmul.f32 %v2926_v15, %v1362_v6  ;;  %v1360_v13 = vadd.f32 %v1351_v8, %v1325_v11 }
 0x9a6   :  { %v1365_v14 = vmax.f32 %v1361_v10, 0.0  ;;  %1376 = vrot.lane.b32.xlu1 %v1367_v9, %s2593_s18 }
 0x9a7   :  { %v1364_v16 = vmax.f32 %v1360_v13, 0.0  ;;  %1374 = vrot.lane.b32.xlu0 %v1366_v12, %s2593_s18 }
 0x9a8   :  { %v1369_v17 = vmul.f32 %v2926_v15, %v1365_v14 }
 0x9a9   :  { %v1368_v18 = vmul.f32 %v2926_v15, %v1364_v16  ;;  %v1646_v15 = vld [vmem:[#allocation18] sm:$0xff]  ;;  %v2595_v16 = vmov 0.0|0.0  }
 0x9aa   :  { %1380 = vrot.lane.b32.xlu1 %v1369_v17, %s2593_s18  ;;  %2125 = vmatprep.mubr.msk.f32.mxu1 %vm820_vm4, %v1646_v15 }
 0x9ab   :  { %1378 = vrot.lane.b32.xlu0 %v1368_v18, %s2593_s18 }
 0xa18   :  { %v1377_v19 = vpop.permute.xlu1 %1376 }
 0xa19   :  { %1387 = vst.msk [vmem:[#allocation3 + $0x8] sm:$0xff] %vm422_vm3, %v1377_v19  ;;  %v1375_v20 = vpop.permute.xlu0 %1374 }
 0xa1a   :  { %1386 = vst.msk [vmem:[#allocation3] sm:$0xff] %vm422_vm3, %v1375_v20 }
 0xa1c   :  { %v1381_v21 = vpop.permute.xlu1 %1380 }
 0xa1d   :  { %1389 = vst.msk [vmem:[#allocation3 + $0x18] sm:$0xff] %vm422_vm3, %v1381_v21  ;;  %v1379_v22 = vpop.permute.xlu0 %1378 }
 0xa1e   :  { %1388 = vst.msk [vmem:[#allocation3 + $0x10] sm:$0xff] %vm422_vm3, %v1379_v22 }
 0xa20   :  { %v1391_v23 = vld [vmem:[#allocation3 + $0x8] sm:$0xff] }
 0xa21   :  { %v1390_v24 = vld [vmem:[#allocation3] sm:$0xff] }
 0xa22   :  { %v2238_v26 = vpack.i.bf16 %v1391_v23, %v1390_v24  ;;  %v2166_v27 = vpack.c.bf16 %v1391_v23, %v1390_v24 }
 0xa24   :  { %2239 = vrot.lane.b32.xlu0 %v2238_v26, %s2591_s23  ;;  %v1393_v28 = vld [vmem:[#allocation3 + $0x18] sm:$0xff] }
 0xa25   :  { %v1392_v29 = vld [vmem:[#allocation3 + $0x10] sm:$0xff] }
 0xa26   :  { %v2243_v30 = vpack.i.bf16 %v1393_v28, %v1392_v29  ;;  %v2170_v31 = vpack.c.bf16 %v1393_v28, %v1392_v29 }
 0xa28   :  { %2249 = vrot.lane.b32.xlu0 %v2994_v46, %s2591_s23  ;;  %2244 = vrot.lane.b32.xlu1 %v2243_v30, %s2591_s23  ;;  %s2597_s23 = smov 113  }
 0xa2c   :  { %1625 = vperm.xlu0 %2222, %v1615_v32   ;;  %1620 = vperm.xlu1 %2221, %v1614_v33  }
 0xa30   :  { %1663 = vperm.xlu0 %2222, %v1653_v34   ;;  %1658 = vperm.xlu1 %2221, %v1652_v35  }
 0xa34   :  { %1635 = vperm.xlu0 %2222, %v1617_v36   ;;  %1630 = vperm.xlu1 %2221, %v1616_v37   ;;  %v1823_v37 = vld [vmem:[#allocation23] sm:$0x1f] }
 0xa38   :  { %1673 = vperm.xlu0 %2222, %v1655_v38   ;;  %1668 = vperm.xlu1 %2221, %v1654_v39  }
 0xa96   :  { %v2240_v40 = vpop.permute.xlu0 %2239 }
 0xa97   :  { %v2242_v41 = vunpack.i.h.bf16 %v2240_v40  ;;  %v2241_v42 = vunpack.i.l.bf16 %v2240_v40 }
 0xa99   :  { %v2158_v43 = vpack.c.bf16 %v2242_v41, %v2241_v42 }
 0xa9a   :  { %v2245_v44 = vpop.permute.xlu1 %2244  ;;  %v2250_v45 = vpop.permute.xlu0 %2249 }
 0xa9b   :  { %v2247_v46 = vunpack.i.h.bf16 %v2245_v44  ;;  %v2246_v47 = vunpack.i.l.bf16 %v2245_v44  ;;  %v2252_v48 = vunpack.i.h.bf16 %v2250_v45  ;;  %v2251_v49 = vunpack.i.l.bf16 %v2250_v45  ;;  %2159 = vmatprep.subr.bf16.mxu0 %v2158_v43 }
 0xa9c   :  { %2161 = vmatpush3.bf16.msra.mxu0 %v2158_v43 }
 0xa9d   :  { %v2162_v50 = vpack.c.bf16 %v2247_v46, %v2246_v47  ;;  %v2174_v51 = vpack.c.bf16 %v2252_v48, %v2251_v49 }
 0xa9f   :  { %2163 = vmatprep.subr.bf16.mxu0 %v2162_v50  ;;  %2175 = vmatprep.subr.bf16.mxu1 %v2174_v51 }
 0xaa0   :  { %2165 = vmatpush3.bf16.msra.mxu0 %v2162_v50  ;;  %2177 = vmatpush3.bf16.msra.mxu1 %v2174_v51 }
 0xaa1   :  { %2167 = vmatprep.subr.bf16.mxu0 %v2166_v27 }
 0xaa3   :  { %2102 = vmatmul.mubr.msk.f32.vlgmr.msra.gmra.mrb[8].mxu0 %vm1419_vm5, %v1400_v52  ;;  %2126 = vmatmul.mubr.msk.f32.vlgmr.msra.gmra.mrb[10].mxu1 %vm820_vm4, %v1647_v53 }
 0xaa4   :  { %2169 = vmatpush3.bf16.msra.mxu0 %v2166_v27  ;;  %2104 = vmatprep.mubr.msk.f32.mxu0 %vm1419_vm5, %v1401_v54 }
 0xaa5   :  { %2171 = vmatprep.subr.bf16.mxu0 %v2170_v31  ;;  %2128 = vmatprep.mubr.msk.f32.mxu1 %vm820_vm4, %v1648_v55 }
 0xaa7   :  { %2105 = vmatmul.mubr.msk.f32.gmra.mrb[10].mxu0 %vm1419_vm5, %v1402_v56  ;;  %2129 = vmatmul.mubr.msk.f32.gmra.mrb[12].mxu1 %vm820_vm4, %v1649_v57  ;;  %v1822_v56 = vld [vmem:[#allocation21] sm:$0x1f] }
 0xaa8   :  { %2173 = vmatpush3.bf16.msra.mxu0 %v2170_v31  ;;  %2115 = vmatprep.mubr.msk.f32.mxu0 %vm1419_vm5, %v1394_v58 }
 0xaa9   :  { %2178 = vmatprep.subr.bf16.mxu0 %v2595_v16 }
 0xaab   :  { %2116 = vmatmul.mubr.msk.f32.vlgmr.msra.gmra.mrb[8].mxu0 %vm1419_vm5, %v1395_v59  ;;  %v1626_v62 = vpop.permute.xlu0 %1625  ;;  %v1621_v63 = vpop.permute.xlu1 %1620 }
 0xaac   :  { %2118 = vmatprep.mubr.msk.f32.mxu0 %vm1419_vm5, %v1396_v60 }
 0xaaf   :  { %2119 = vmatmul.mubr.msk.f32.gmra.mrb[10].mxu0 %vm1419_vm5, %v1397_v61  ;;  %v1664_v3 = vpop.permute.xlu0 %1663  ;;  %v1659_v4 = vpop.permute.xlu1 %1658 }
 0xab0   :  { %2139 = vmatprep.mubr.msk.f32.mxu0 %vm2589_vm0, %v2588_v0 }
 0xab3   :  { %v1636_v7 = vpop.permute.xlu0 %1635  ;;  %v1631_v9 = vpop.permute.xlu1 %1630 }
 0xab7   :  { %v1674_v22 = vpop.permute.xlu0 %1673  ;;  %v1669_v25 = vpop.permute.xlu1 %1668 }
 0xb76   :  { %v2127_v1 = vpop.f32.mrb[10].mxu1 }
 0xb77   :  { %v1762_v2 = vpop.f32.mrb[11].mxu1  ;;  %v1768_v13 = vadd.f32 %v2127_v1, %v1664_v3 }
 0xb78   :  { %v1763_v17 = vadd.f32 %v1762_v2, %v1659_v4 }
 0xb7a   :  { %v2130_v5 = vpop.f32.mrb[12].mxu1 }
 0xb7b   :  { %v1772_v6 = vpop.f32.mrb[13].mxu1  ;;  %v1778_v15 = vadd.f32 %v2130_v5, %v1674_v22 }
 0xb7c   :  { %v1773_v28 = vadd.f32 %v1772_v6, %v1669_v25 }
 0xb7e   :  { %v2117_v8 = vpop.f32.mrb[8].mxu0 }
 0xb7f   :  { %v1639_v10 = vadd.f32 %v2117_v8, %v1626_v62  ;;  %v1595_v11 = vpop.f32.mrb[9].mxu0 }
 0xb80   :  { %v1638_v12 = vadd.f32 %v1621_v63, %v1595_v11 }
 0xb81   :  { %v1643_v14 = vmax.f32 %v1639_v10, 0.0 }
 0xb82   :  { %v1642_v0 = vmax.f32 %v1638_v12, 0.0  ;;  %v2120_v18 = vpop.f32.mrb[10].mxu0 }
 0xb83   :  { %v1782_v19 = vadd.f32 %v1768_v13, %v1643_v14  ;;  %v1641_v20 = vadd.f32 %v2120_v18, %v1636_v7  ;;  %v1605_v21 = vpop.f32.mrb[11].mxu0 }
 0xb84   :  { %v1781_v23 = vadd.f32 %v1763_v17, %v1642_v0  ;;  %v1640_v24 = vadd.f32 %v1631_v9, %v1605_v21 }
 0xb85   :  { %v1786_v26 = vmax.f32 %v1782_v19, 0.0  ;;  %v1645_v27 = vmax.f32 %v1641_v20, 0.0 }
 0xb86   :  { %v1785_v29 = vmax.f32 %v1781_v23, 0.0  ;;  %v1644_v30 = vmax.f32 %v1640_v24, 0.0 }
 0xb87   :  { %v1784_v31 = vadd.f32 %v1778_v15, %v1645_v27 }
 0xb88   :  { %v1783_v32 = vadd.f32 %v1773_v28, %v1644_v30  ;;  %v2258_v33 = vpack.i.bf16 %v1786_v26, %v1785_v29 }
 0xb89   :  { %v1788_v34 = vmax.f32 %v1784_v31, 0.0 }
 0xb8a   :  { %v1787_v35 = vmax.f32 %v1783_v32, 0.0  ;;  %2259 = vrot.lane.b32.xlu0 %v2258_v33, %s2596_s12  ;;  %2254 = vrot.lane.b32.xlu1 %v2258_v33, %s2597_s23 }
 0xb8c   :  { %v2268_v36 = vpack.i.bf16 %v1788_v34, %v1787_v35 }
 0xb8e   :  { %2269 = vrot.lane.b32.xlu0 %v2268_v36, %s2596_s12  ;;  %2264 = vrot.lane.b32.xlu1 %v2268_v36, %s2597_s23 }
 0xb92   :  { %1826 = vperm.xlu1 %2221, %v1823_v37  }
 0xbfc   :  { %v2260_v38 = vpop.permute.xlu0 %2259  ;;  %v2255_v39 = vpop.permute.xlu1 %2254 }
 0xbfd   :  { %v2262_v40 = vunpack.i.h.bf16 %v2260_v38  ;;  %v2261_v41 = vunpack.i.l.bf16 %v2260_v38  ;;  %v2257_v42 = vunpack.i.h.bf16 %v2255_v39  ;;  %v2256_v43 = vunpack.i.l.bf16 %v2255_v39 }
 0xbff   :  { %v1819_v44 = vsel %vm1817_vm6, %v2257_v42, %v2262_v40  ;;  %v1818_v45 = vsel %vm1817_vm6, %v2256_v43, %v2261_v41 }
 0xc00   :  { %v2179_v46 = vpack.c.bf16 %v1819_v44, %v1818_v45  ;;  %v2270_v47 = vpop.permute.xlu0 %2269  ;;  %v2265_v48 = vpop.permute.xlu1 %2264 }
 0xc01   :  { %v2272_v49 = vunpack.i.h.bf16 %v2270_v47  ;;  %v2271_v50 = vunpack.i.l.bf16 %v2270_v47  ;;  %v2267_v51 = vunpack.i.h.bf16 %v2265_v48  ;;  %v2266_v52 = vunpack.i.l.bf16 %v2265_v48 }
 0xc02   :  { %2180 = vmatpush3.bf16.msra.mxu0 %v2179_v46 }
 0xc03   :  { %v1821_v53 = vsel %vm1817_vm6, %v2267_v51, %v2272_v49  ;;  %v1820_v54 = vsel %vm1817_vm6, %v2266_v52, %v2271_v50  ;;  %2181 = vmatprep.subr.bf16.mxu0 %v2595_v16 }
 0xc04   :  { %v2182_v55 = vpack.c.bf16 %v1821_v53, %v1820_v54 }
 0xc06   :  { %2183 = vmatpush3.bf16.msra.mxu0 %v2182_v55 }
 0xc09   :  { %2140 = vmatmul.mubr.msk.f32.vlgmr.msra.gmra.mrb[12].mxu0 %vm1419_vm5, %v1822_v56 }
 0xc11   :  { %v1827_v57 = vpop.permute.xlu1 %1826 }
 0xcdc   :  { %v1898_v58 = vpop.f32.mrb[12].mxu0 }
 0xcdd   :  { %v1899_v59 = vadd.f32 %v1898_v58, %v1827_v57  ;;  %v2141_v60 = vpop.f32.mrb[13].mxu0 }
 0xcdf   :  { %1903 = vst.msk [vmem:[%s3084_s20] sm:$0x1f] %vm1902_vm7, %v1899_v59 }
 0xce0   :  { %1908 = vsyncpa [#allocation5], 1 }
 0xce1   :  { %1909 = vsyncpa [#allocation7], 1 }
 0xce2   :  { %1910 = vsyncpa [#allocation10], 1 }
 0xce3   :  { %1911 = vsyncpa [#allocation13], 1 }
 0xce4   :  { %1912 = vsyncpa [#allocation16], 1 }
 0xce5   :  { %1913 = vsyncpa [#allocation19], 1 }
 0xce6   :  { %1914 = vsyncpa [#allocation22], 1 }

</bundles_post_ra>
